<compile_context>
chip_gen: v5e
topology: v5e:2x2
jax: 0.10.0
libtpu: 0.0.40
codegen_flags: <defaults>
</compile_context>

<pallas_src>
import jax
import jax.numpy as jnp
from jax import lax
from jax.experimental import pallas as pl
from jax.experimental.pallas import tpu as pltpu

EPS = 1e-9


def _dice(x, a_half, b_half):
    """Dice over the batch axis (dim 0) of (B, D, tT); torch unbiased var.

    a_half = 0.5*(1+alpha), b_half = 0.5*(1-alpha) (precomputed SMEM scalars):
      alpha*x*(1-p) + x*p == x*(a_half + b_half*tanh(norm/2)),
      p = sigmoid(norm) == 0.5*(1 + tanh(norm/2)).
    """
    n = x.shape[0]
    mean = jnp.mean(x, axis=0, keepdims=True)
    xc = x - mean
    var = jnp.sum(xc * xc, axis=0, keepdims=True) * (1.0 / (n - 1))
    g = jnp.tanh(xc * (0.5 * lax.rsqrt(var + EPS)))      # rsqrt/tanh -> EUP
    return x * (a_half + b_half * g)


def activation_unit_kernel(ub_ref, w1b_ref, hq_ref, w2b_ref, b2_ref, w3_ref,
                           b3_ref, dice_ref, out_ref):
    # ub_ref   (B, E, tT)   streamed user-behavior tile, T lane-minor
    # w1b_ref  (B, d1, E)   per-batch folded FC1 weight (query already folded in)
    # hq_ref   (B, d1)      query-only FC1 contribution (incl. bias b1)
    # w2b_ref  (B, d2, d1)  FC2 weight, batch-broadcast host-side
    # b2_ref   (d2, 1)      FC2 bias column
    # w3_ref   (d2, 1)      FC3 weight column
    # b3_ref   (1, 1) SMEM  FC3 bias scalar
    # dice_ref (2, 2) SMEM  [layer, {0.5*(1+alpha), 0.5*(1-alpha)}]
    # out_ref  (B, tT)      lane-dense output tile
    ub = ub_ref[...]

    # FC1: single batched K=E contraction; q-term/bias added via resident hq.
    h = jnp.einsum('bdk,bkt->bdt', w1b_ref[...], ub,
                   preferred_element_type=jnp.float32)
    h = h + hq_ref[...][:, :, None]                       # (B, d1, tT)
    h = _dice(h, dice_ref[0, 0], dice_ref[0, 1])
    # TODO(synk): nn.Dropout(p=0.2) is identity in eval mode; training-mode
    # dropout (and its RNG) is not implemented.

    # FC2: batched K=d1 contraction, lane-dense (B, d2, tT) activations.
    h = jnp.einsum('bdk,bkt->bdt', w2b_ref[...], h,
                   preferred_element_type=jnp.float32)
    h = h + b2_ref[...]                                   # (d2,1) broadcast
    h = _dice(h, dice_ref[1, 0], dice_ref[1, 1])

    # FC3 (d2 -> 1): VPU multiply + sublane reduce; stays lane-dense (B, tT).
    out = jnp.sum(h * w3_ref[...], axis=1) + b3_ref[0, 0]
    out_ref[...] = out.astype(out_ref.dtype)


def _pick_tile_t(T, B, E, d1=32, d2=16, vmem_budget_bytes=8 * 1024 * 1024):
    """Largest power-of-two T tile that divides T, keeps the working set under
    a VMEM budget that is safe on all of v5e/v6e/v7x, and leaves >= 4 grid
    steps so v7x's two TensorCores each keep pipeline overlap."""
    if T % 128 != 0:
        return T                        # single full-T block (full-dim spec)
    e_pad = ((E + 7) // 8) * 8
    # Padding-aware per-t f32 bytes in the transposed (lane-dense) layout:
    # double-buffered ub tile, FC1/FC2 activation slabs (+Dice temps),
    # double-buffered (B, tT) output.  Minor dims are multiples of 128 here,
    # so no hidden lane padding.
    per_t_bytes = 4 * B * (2 * e_pad + 4 * d1 + 4 * d2 + 2)
    cap = max(128, min(512, vmem_budget_bytes // per_t_bytes))
    target = min(cap, max(128, T // 4))   # >= 4 grid steps when possible
    t = 128
    while t * 2 <= target and T % (t * 2) == 0:
        t *= 2
    return t


def activation_unit(query, user_behavior, params, *, tile_t=None):
    """query: (B, 1, E), user_behavior: (B, T, E) -> (B, T, 1) float32."""
    B, one, E = query.shape
    assert one == 1
    # Dice uses unbiased variance over the batch dim -> needs B >= 2, and the
    # batch axis must never be tiled (stats are over the full batch).
    assert B >= 2
    T = user_behavior.shape[1]
    w1, b1, w2, b2, w3, b3, alphas = params
    d1 = w1.shape[1]
    d2 = w2.shape[1]

    q2 = query.reshape(B, E).astype(jnp.float32)
    # One-time XLA transpose so the streamed tile is T-lane-minor.
    ub_t = jnp.transpose(user_behavior.astype(jnp.float32), (0, 2, 1))  # (B,E,T)

    # Fold the 4-way concat:  attn @ W1 = q@(Wq+Wd) + ub@(Wu-Wd) + (q*ub)@Wp
    # and fold the query into a per-batch effective FC1 weight:
    #   h1[b,d,t] = hq[b,d] + sum_e ub[b,e,t] * ((Wu-Wd)[e,d] + q[b,e]*Wp[e,d])
    w1q = w1[0:E] + w1[2 * E:3 * E]            # (E, d1)
    w1u = w1[E:2 * E] - w1[2 * E:3 * E]        # (E, d1)
    w1p = w1[3 * E:4 * E]                      # (E, d1)
    hq = q2 @ w1q + b1.reshape(1, d1)                                  # (B, d1)
    weff = w1u[None, :, :] + q2[:, :, None] * w1p[None, :, :]          # (B, E, d1)
    w1b = jnp.transpose(weff, (0, 2, 1))                               # (B, d1, E)
    w2b = jnp.broadcast_to(w2.T[None], (B, d2, d1))                    # (B, d2, d1)
    b2col = b2.reshape(d2, 1)
    w3col = w3.reshape(d2, 1)
    b3s = b3.reshape(1, 1)
    a = alphas.reshape(-1)
    dice_scal = jnp.stack([0.5 * (1.0 + a), 0.5 * (1.0 - a)], axis=1)  # (2, 2)

    tT = int(tile_t) if tile_t is not None else _pick_tile_t(T, B, E, d1, d2)
    assert T % tT == 0
    grid = (T // tT,)

    def resident(arr):
        n = arr.ndim
        return pl.BlockSpec(arr.shape, lambda i, _n=n: (0,) * _n)

    smem = pl.BlockSpec(memory_space=pltpu.MemorySpace.SMEM)

    out2d = pl.pallas_call(
        activation_unit_kernel,
        out_shape=jax.ShapeDtypeStruct((B, T), jnp.float32),
        grid=grid,
        in_specs=[
            pl.BlockSpec((B, E, tT), lambda i: (0, 0, i)),   # ub T-tile (lane-minor)
            resident(w1b),                                   # folded FC1 weight
            resident(hq),                                    # query term + b1
            resident(w2b),                                   # FC2 weight
            resident(b2col),                                 # FC2 bias column
            resident(w3col),                                 # FC3 weight column
            smem,                                            # b3        (1, 1)
            smem,                                            # dice_scal (2, 2)
        ],
        out_specs=pl.BlockSpec((B, tT), lambda i: (0, i)),
        compiler_params=pltpu.CompilerParams(
            dimension_semantics=("parallel",),
            vmem_limit_bytes=32 * 1024 * 1024),
    )(ub_t, w1b, hq, w2b, b2col, w3col, b3s, dice_scal)

    # Lane-dense (B, T) from the kernel; restore the module's (B, T, 1) shape.
    return out2d.reshape(B, T, 1)


def ref_activation_unit(query, user_behavior, params):
    """Pure-JAX reference mirroring the torch module (eval mode)."""
    w1, b1, w2, b2, w3, b3, alphas = params
    B, _, E = query.shape
    T = user_behavior.shape[1]
    queries = jnp.broadcast_to(query, (B, T, E))
    x = jnp.concatenate(
        [queries, user_behavior, queries - user_behavior,
         queries * user_behavior], axis=-1)
    al = alphas.reshape(-1)
    for (w, b, a) in ((w1, b1, al[0]), (w2, b2, al[1])):
        x = x @ w + b
        mean = jnp.mean(x, axis=0)
        var = jnp.var(x, axis=0, ddof=1)
        p = jax.nn.sigmoid((x - mean) / jnp.sqrt(var + EPS))
        x = a * x * (1.0 - p) + x * p
    return x @ w3 + b3


if __name__ == "__main__":
    B, T, E = 8, 512, 8           # batch, seq_len, embedding_dim
    fc_dims = [32, 16]
    in_dim = 4 * E

    key = jax.random.PRNGKey(0)
    k_q, k_ub, k_w1, k_b1, k_w2, k_b2, k_w3, k_b3 = jax.random.split(key, 8)

    query = jax.random.normal(k_q, (B, 1, E), dtype=jnp.float32)
    user_behavior = jax.random.normal(k_ub, (B, T, E), dtype=jnp.float32)

    # Torch Linear weight is (out, in); store the transposed (in, out) layout.
    w1 = 0.1 * jax.random.normal(k_w1, (in_dim, fc_dims[0]), dtype=jnp.float32)
    b1 = 0.1 * jax.random.normal(k_b1, (1, fc_dims[0]), dtype=jnp.float32)
    w2 = 0.1 * jax.random.normal(k_w2, (fc_dims[0], fc_dims[1]), dtype=jnp.float32)
    b2 = 0.1 * jax.random.normal(k_b2, (1, fc_dims[1]), dtype=jnp.float32)
    w3 = 0.1 * jax.random.normal(k_w3, (fc_dims[1], 1), dtype=jnp.float32)
    b3 = 0.1 * jax.random.normal(k_b3, (1, 1), dtype=jnp.float32)
    # Dice alphas (torch inits to zeros; use nonzero values to exercise the path).
    alphas = jnp.array([[0.25, -0.5]], dtype=jnp.float32)

    params = (w1, b1, w2, b2, w3, b3, alphas)

    out = activation_unit(query, user_behavior, params)
    out = jax.block_until_ready(out)

    ref = ref_activation_unit(query, user_behavior, params)
    assert out.shape == (B, T, 1), out.shape
    max_err = float(jnp.max(jnp.abs(out - ref)))
    assert jnp.allclose(out, ref, rtol=1e-4, atol=1e-4), max_err

    print("KERNEL_OK")
</pallas_src>

<mosaic_0001>
module attributes {stable_mosaic.version = 11 : i64} {
  func.func @activation_unit_kernel(%arg0: i32, %arg1: memref<8x8x128xf32, #tpu.memory_space<vmem>>, %arg2: memref<8x32x8xf32, #tpu.memory_space<vmem>>, %arg3: memref<8x32xf32, #tpu.memory_space<vmem>>, %arg4: memref<8x16x32xf32, #tpu.memory_space<vmem>>, %arg5: memref<16x1xf32, #tpu.memory_space<vmem>>, %arg6: memref<16x1xf32, #tpu.memory_space<vmem>>, %arg7: memref<1x1xf32, #tpu.memory_space<smem>>, %arg8: memref<2x2xf32, #tpu.memory_space<smem>>, %arg9: memref<8x128xf32, #tpu.memory_space<vmem>>) attributes {dimension_semantics = [#tpu.dimension_semantics<parallel>], iteration_bounds = array<i64: 4>, scalar_prefetch = 0 : i64, scratch_operands = 0 : i64, tpu.core_type = #tpu.core_type<tc>, window_params = [{transform_indices = @transform_0, window_bounds = array<i64: 8, 8, 128>}, {pipeline_mode = #tpu.pipeline_mode<synchronous>, transform_indices = @transform_1, window_bounds = array<i64: 8, 32, 8>}, {pipeline_mode = #tpu.pipeline_mode<synchronous>, transform_indices = @transform_2, window_bounds = array<i64: 8, 32>}, {pipeline_mode = #tpu.pipeline_mode<synchronous>, transform_indices = @transform_3, window_bounds = array<i64: 8, 16, 32>}, {pipeline_mode = #tpu.pipeline_mode<synchronous>, transform_indices = @transform_4, window_bounds = array<i64: 16, 1>}, {pipeline_mode = #tpu.pipeline_mode<synchronous>, transform_indices = @transform_5, window_bounds = array<i64: 16, 1>}, {transform_indices = @transform_6, window_bounds = array<i64: 1, 1>}, {transform_indices = @transform_7, window_bounds = array<i64: 2, 2>}, {transform_indices = @transform_8, window_bounds = array<i64: 8, 128>}]} {
    %c0 = arith.constant 0 : index
    %c0_0 = arith.constant 0 : index
    %c0_1 = arith.constant 0 : index
    %0 = vector.load %arg1[%c0, %c0_0, %c0_1] : memref<8x8x128xf32, #tpu.memory_space<vmem>>, vector<8x8x128xf32>
    %c0_2 = arith.constant 0 : index
    %c0_3 = arith.constant 0 : index
    %c0_4 = arith.constant 0 : index
    %1 = vector.load %arg2[%c0_2, %c0_3, %c0_4] : memref<8x32x8xf32, #tpu.memory_space<vmem>>, vector<8x32x8xf32>
    "tpu.trace_start"() <{level = 10 : i32, message = "bdk,bkt->bdt"}> : () -> ()
    %cst = arith.constant dense<0.000000e+00> : vector<8x32x128xf32>
    %2 = tpu.matmul %1, %0, %cst {dimension_numbers = #tpu.dot_dimension_numbers<[2], [1], [1], [2], [0, 0, 0, 1, 1, 2], [0], [0]>} : vector<8x32x8xf32>, vector<8x8x128xf32>, vector<8x32x128xf32> -> vector<8x32x128xf32>
    "tpu.trace_stop"() : () -> ()
    %c0_5 = arith.constant 0 : index
    %c0_6 = arith.constant 0 : index
    %3 = vector.load %arg3[%c0_5, %c0_6] : memref<8x32xf32, #tpu.memory_space<vmem>>, vector<8x32xf32>
    %4 = vector.shape_cast %3 : vector<8x32xf32> to vector<8x32x1xf32>
    %5 = vector.broadcast %4 : vector<8x32x1xf32> to vector<8x32x128xf32>
    %6 = arith.addf %2, %5 : vector<8x32x128xf32>
    %c0_7 = arith.constant 0 : index
    %c0_8 = arith.constant 0 : index
    %7 = memref.load %arg8[%c0_7, %c0_8] : memref<2x2xf32, #tpu.memory_space<smem>>
    %c0_9 = arith.constant 0 : index
    %c1 = arith.constant 1 : index
    %8 = memref.load %arg8[%c0_9, %c1] : memref<2x2xf32, #tpu.memory_space<smem>>
    %cst_10 = arith.constant dense<0.000000e+00> : vector<32x128xf32>
    %9 = vector.multi_reduction <add>, %6, %cst_10 [0] : vector<8x32x128xf32> to vector<32x128xf32>
    %10 = vector.shape_cast %9 : vector<32x128xf32> to vector<1x32x128xf32>
    %cst_11 = arith.constant 8.000000e+00 : f32
    %11 = vector.broadcast %cst_11 : f32 to vector<1x32x128xf32>
    %12 = arith.divf %10, %11 : vector<1x32x128xf32>
    %13 = vector.broadcast %12 : vector<1x32x128xf32> to vector<8x32x128xf32>
    %14 = arith.subf %6, %13 : vector<8x32x128xf32>
    %15 = arith.mulf %14, %14 : vector<8x32x128xf32>
    %cst_12 = arith.constant dense<0.000000e+00> : vector<32x128xf32>
    %16 = vector.multi_reduction <add>, %15, %cst_12 [0] : vector<8x32x128xf32> to vector<32x128xf32>
    %17 = vector.shape_cast %16 : vector<32x128xf32> to vector<1x32x128xf32>
    %cst_13 = arith.constant 0.142857149 : f32
    %18 = vector.broadcast %cst_13 : f32 to vector<1x32x128xf32>
    %19 = arith.mulf %17, %18 : vector<1x32x128xf32>
    %cst_14 = arith.constant 9.99999971E-10 : f32
    %20 = vector.broadcast %cst_14 : f32 to vector<1x32x128xf32>
    %21 = arith.addf %19, %20 : vector<1x32x128xf32>
    %22 = math.rsqrt %21 : vector<1x32x128xf32>
    %cst_15 = arith.constant 5.000000e-01 : f32
    %23 = vector.broadcast %cst_15 : f32 to vector<1x32x128xf32>
    %24 = arith.mulf %23, %22 : vector<1x32x128xf32>
    %25 = vector.broadcast %24 : vector<1x32x128xf32> to vector<8x32x128xf32>
    %26 = arith.mulf %14, %25 : vector<8x32x128xf32>
    %27 = math.tanh %26 : vector<8x32x128xf32>
    %28 = vector.broadcast %8 : f32 to vector<8x32x128xf32>
    %29 = arith.mulf %28, %27 : vector<8x32x128xf32>
    %30 = vector.broadcast %7 : f32 to vector<8x32x128xf32>
    %31 = arith.addf %30, %29 : vector<8x32x128xf32>
    %32 = arith.mulf %6, %31 : vector<8x32x128xf32>
    %c0_16 = arith.constant 0 : index
    %c0_17 = arith.constant 0 : index
    %c0_18 = arith.constant 0 : index
    %33 = vector.load %arg4[%c0_16, %c0_17, %c0_18] : memref<8x16x32xf32, #tpu.memory_space<vmem>>, vector<8x16x32xf32>
    "tpu.trace_start"() <{level = 10 : i32, message = "bdk,bkt->bdt"}> : () -> ()
    %cst_19 = arith.constant dense<0.000000e+00> : vector<8x16x128xf32>
    %34 = tpu.matmul %33, %32, %cst_19 {dimension_numbers = #tpu.dot_dimension_numbers<[2], [1], [1], [2], [0, 0, 0, 1, 1, 2], [0], [0]>} : vector<8x16x32xf32>, vector<8x32x128xf32>, vector<8x16x128xf32> -> vector<8x16x128xf32>
    "tpu.trace_stop"() : () -> ()
    %c0_20 = arith.constant 0 : index
    %c0_21 = arith.constant 0 : index
    %35 = vector.load %arg5[%c0_20, %c0_21] : memref<16x1xf32, #tpu.memory_space<vmem>>, vector<16x1xf32>
    %36 = vector.shape_cast %35 : vector<16x1xf32> to vector<1x16x1xf32>
    %37 = vector.broadcast %36 : vector<1x16x1xf32> to vector<8x16x128xf32>
    %38 = arith.addf %34, %37 : vector<8x16x128xf32>
    %c1_22 = arith.constant 1 : index
    %c0_23 = arith.constant 0 : index
    %39 = memref.load %arg8[%c1_22, %c0_23] : memref<2x2xf32, #tpu.memory_space<smem>>
    %c1_24 = arith.constant 1 : index
    %c1_25 = arith.constant 1 : index
    %40 = memref.load %arg8[%c1_24, %c1_25] : memref<2x2xf32, #tpu.memory_space<smem>>
    %cst_26 = arith.constant dense<0.000000e+00> : vector<16x128xf32>
    %41 = vector.multi_reduction <add>, %38, %cst_26 [0] : vector<8x16x128xf32> to vector<16x128xf32>
    %42 = vector.shape_cast %41 : vector<16x128xf32> to vector<1x16x128xf32>
    %cst_27 = arith.constant 8.000000e+00 : f32
    %43 = vector.broadcast %cst_27 : f32 to vector<1x16x128xf32>
    %44 = arith.divf %42, %43 : vector<1x16x128xf32>
    %45 = vector.broadcast %44 : vector<1x16x128xf32> to vector<8x16x128xf32>
    %46 = arith.subf %38, %45 : vector<8x16x128xf32>
    %47 = arith.mulf %46, %46 : vector<8x16x128xf32>
    %cst_28 = arith.constant dense<0.000000e+00> : vector<16x128xf32>
    %48 = vector.multi_reduction <add>, %47, %cst_28 [0] : vector<8x16x128xf32> to vector<16x128xf32>
    %49 = vector.shape_cast %48 : vector<16x128xf32> to vector<1x16x128xf32>
    %cst_29 = arith.constant 0.142857149 : f32
    %50 = vector.broadcast %cst_29 : f32 to vector<1x16x128xf32>
    %51 = arith.mulf %49, %50 : vector<1x16x128xf32>
    %cst_30 = arith.constant 9.99999971E-10 : f32
    %52 = vector.broadcast %cst_30 : f32 to vector<1x16x128xf32>
    %53 = arith.addf %51, %52 : vector<1x16x128xf32>
    %54 = math.rsqrt %53 : vector<1x16x128xf32>
    %cst_31 = arith.constant 5.000000e-01 : f32
    %55 = vector.broadcast %cst_31 : f32 to vector<1x16x128xf32>
    %56 = arith.mulf %55, %54 : vector<1x16x128xf32>
    %57 = vector.broadcast %56 : vector<1x16x128xf32> to vector<8x16x128xf32>
    %58 = arith.mulf %46, %57 : vector<8x16x128xf32>
    %59 = math.tanh %58 : vector<8x16x128xf32>
    %60 = vector.broadcast %40 : f32 to vector<8x16x128xf32>
    %61 = arith.mulf %60, %59 : vector<8x16x128xf32>
    %62 = vector.broadcast %39 : f32 to vector<8x16x128xf32>
    %63 = arith.addf %62, %61 : vector<8x16x128xf32>
    %64 = arith.mulf %38, %63 : vector<8x16x128xf32>
    %c0_32 = arith.constant 0 : index
    %c0_33 = arith.constant 0 : index
    %65 = vector.load %arg6[%c0_32, %c0_33] : memref<16x1xf32, #tpu.memory_space<vmem>>, vector<16x1xf32>
    %66 = vector.shape_cast %65 : vector<16x1xf32> to vector<1x16x1xf32>
    %67 = vector.broadcast %66 : vector<1x16x1xf32> to vector<8x16x128xf32>
    %68 = arith.mulf %64, %67 : vector<8x16x128xf32>
    %cst_34 = arith.constant dense<0.000000e+00> : vector<8x128xf32>
    %69 = vector.multi_reduction <add>, %68, %cst_34 [1] : vector<8x16x128xf32> to vector<8x128xf32>
    %c0_35 = arith.constant 0 : index
    %c0_36 = arith.constant 0 : index
    %70 = memref.load %arg7[%c0_35, %c0_36] : memref<1x1xf32, #tpu.memory_space<smem>>
    %71 = vector.broadcast %70 : f32 to vector<8x128xf32>
    %72 = arith.addf %69, %71 : vector<8x128xf32>
    %c0_37 = arith.constant 0 : index
    %c0_38 = arith.constant 0 : index
    %73 = vector.load %arg9[%c0_37, %c0_38] : memref<8x128xf32, #tpu.memory_space<vmem>>, vector<8x128xf32>
    tpu.vector_store %arg9[%c0_37, %c0_38], %72 {strides = array<i32>} : memref<8x128xf32, #tpu.memory_space<vmem>>, vector<8x128xf32>,
    return
  }
  func.func @transform_0(%arg0: i32) -> (i32, i32, i32) {
    %c0_i32 = arith.constant 0 : i32
    %c0_i32_0 = arith.constant 0 : i32
    %c0_i32_1 = arith.constant 0 : i32
    return %c0_i32, %c0_i32_0, %arg0 : i32, i32, i32
  }
  func.func @transform_1(%arg0: i32) -> (i32, i32, i32) {
    %c0_i32 = arith.constant 0 : i32
    %c0_i32_0 = arith.constant 0 : i32
    %c0_i32_1 = arith.constant 0 : i32
    %c0_i32_2 = arith.constant 0 : i32
    return %c0_i32, %c0_i32_0, %c0_i32_1 : i32, i32, i32
  }
  func.func @transform_2(%arg0: i32) -> (i32, i32) {
    %c0_i32 = arith.constant 0 : i32
    %c0_i32_0 = arith.constant 0 : i32
    %c0_i32_1 = arith.constant 0 : i32
    return %c0_i32, %c0_i32_0 : i32, i32
  }
  func.func @transform_3(%arg0: i32) -> (i32, i32, i32) {
    %c0_i32 = arith.constant 0 : i32
    %c0_i32_0 = arith.constant 0 : i32
    %c0_i32_1 = arith.constant 0 : i32
    %c0_i32_2 = arith.constant 0 : i32
    return %c0_i32, %c0_i32_0, %c0_i32_1 : i32, i32, i32
  }
  func.func @transform_4(%arg0: i32) -> (i32, i32) {
    %c0_i32 = arith.constant 0 : i32
    %c0_i32_0 = arith.constant 0 : i32
    %c0_i32_1 = arith.constant 0 : i32
    return %c0_i32, %c0_i32_0 : i32, i32
  }
  func.func @transform_5(%arg0: i32) -> (i32, i32) {
    %c0_i32 = arith.constant 0 : i32
    %c0_i32_0 = arith.constant 0 : i32
    %c0_i32_1 = arith.constant 0 : i32
    return %c0_i32, %c0_i32_0 : i32, i32
  }
  func.func @transform_6(%arg0: i32) -> (i32, i32) {
    %c0_i32 = arith.constant 0 : i32
    %c0_i32_0 = arith.constant 0 : i32
    %c0_i32_1 = arith.constant 0 : i32
    return %c0_i32, %c0_i32_0 : i32, i32
  }
  func.func @transform_7(%arg0: i32) -> (i32, i32) {
    %c0_i32 = arith.constant 0 : i32
    %c0_i32_0 = arith.constant 0 : i32
    %c0_i32_1 = arith.constant 0 : i32
    return %c0_i32, %c0_i32_0 : i32, i32
  }
  func.func @transform_8(%arg0: i32) -> (i32, i32) {
    %c0_i32 = arith.constant 0 : i32
    %c0_i32_0 = arith.constant 0 : i32
    return %c0_i32, %arg0 : i32, i32
  }
}

</mosaic_0001>

<bundles_post_ra>
// kernel: tpu_custom_call.1
= control target key start
LH: loop header
LB: loop body
LE: loop exit
PB: predicated region body
PF: predicated region fallthrough
CT: control target
= control target key end

     0   :  { %s3524_s0 = inlined_call_operand.vmem [shape: f32[8,8,512], index: 0, kind: input, shape index: {}]   ;;  %s3525_s1 = inlined_call_operand.vmem [shape: f32[8,32,8], index: 1, kind: input, shape index: {}]   ;;  %s3526_s2 = inlined_call_operand.vmem [shape: f32[8,32], index: 2, kind: input, shape index: {}]   ;;  %s3527_s3 = inlined_call_operand.hbm [shape: f32[8,16,32], index: 3, kind: input, shape index: {}]   ;;  %s3528_s4 = inlined_call_operand.vmem [shape: f32[16,1], index: 4, kind: input, shape index: {}]   ;;  %s3529_s5 = inlined_call_operand.vmem [shape: f32[16,1], index: 5, kind: input, shape index: {}]   ;;  %s3530_s6 = inlined_call_operand.<no memory space> [shape: f32[1,1], index: 6, kind: input, shape index: {}]   ;;  %s3531_s7 = inlined_call_operand.vmem [shape: f32[2,2], index: 7, kind: input, shape index: {}]   ;;  %s3532_s8 = inlined_call_operand.hbm [shape: f32[8,512], index: 8, kind: output, shape index: {}]  }
   0x1   :  { %13 = sst [smem:[#allocation2]] %s3530_s6 }
   0x2   :  { %14 = vsyncpa [#allocation5], 0 }
   0x3   :  { %15 = vsyncpa [#allocation7], 0 }
   0x4   :  { %16 = vsyncpa [#allocation6], 0 }
   0x5   :  { %18 = vsyncpa [#allocation6 + $0x1], 0  ;;  %s2412_s29 = smov 0   ;;  %s2414_s30 = smov 0  }
   0x6   :  { %s2416_s9 = smov 0   ;;  %s2418_s10 = smov 0  }
   0x7 LB: > { %s2433_s6 = sadd.s32 4294967295, %s2356_s10   ;;  %s1972_s11 = sadd.s32 4294967294, %s2356_s10   ;;  %s2356_s10 = sphi %s2418_s10, %s3601_s10   ;;  %s2352_s9 = sphi %s2416_s9, %s3600_s9   ;;  %s2348_s30 = sphi %s2414_s30, %s3599_s30   ;;  %s2344_s29 = sphi %s2412_s29, %s3598_s29  }
   0x8   : > { %s2437_s12 = sadd.s32 1, %s2356_s10   ;;  %s31_s13 = sadd.s32 1, %s2352_s9 }
   0x9   : > { %s28_s14 = ssub.s32 %s2356_s10, %s2437_s12  ;;  %p38_p0 = scmp.ne.s32.totalorder %s2352_s9, %s2348_s30 }
   0xa   : > { %p29_p1 = scmp.eq.s32.totalorder %s28_s14, 0  ;;  %p39_p2 = scmp.eq.s32.totalorder %s2356_s10, 0 }
   0xb   : > { %p215_p3 = scmp.eq.s32.totalorder %s2433_s6, 3  ;;  %p220_p4 = scmp.ne.s32.totalorder %s2348_s30, %s2344_s29 }
   0xc   : > { %s2449_s15 = scalar_select %p29_p1, %s2352_s9, %s31_s13  }
   0xd   : > { %p2451_p5 = por %p39_p2, %p38_p0  ;;  %p2455_p6 = por %p215_p3, %p38_p0 }
   0xe   : > { %p221_p7 = scmp.eq.s32.totalorder %s1972_s11, 3  ;;  %p1973_p8 = scmp.ge.s32.totalorder %s2356_s10, 1 }
   0xf   : > { %p228_p9 = scmp.lt.s32.totalorder %s2356_s10, 5  ;;  %p2060_p11 = scmp.eq.s32.totalorder %s2433_s6, 0 }
  0x10   : > { %p2461_p10 = por %p221_p7, %p220_p4  ;;  %s245_s22 = sshll.u32 %s3527_s3, 4  ;;  %s246_s22 = int_to_ptr.hbm [resolvable:$true] %s245_s22 }
  0x11   : > { %p2466_p12 = pnand %p1973_p8, %p228_p9  ;;  %s2358_s23 = smov [#allocation4]  }
  0x12   : > { %s247_s24 = sshll.u32 %s2358_s23, 4  ;;  %s269_s27 = sshll.u32 %s3531_s7, 4  ;;  %s248_s24 = int_to_ptr.vmem [resolvable:$true] %s247_s24  ;;  %s270_s27 = int_to_ptr.vmem [resolvable:$true] %s269_s27 }
  0x13   : > { %p2049_p13 = pneg %p2466_p12  ;;  %s2359_s28 = smov 128  }
  0x14   : > { %s2360_s11 = smov 8   ;;  %s2361_s13 = smov [#allocation8]  }
  0x15   : > { %p2050_p0 = pnand %p2060_p11, %p2049_p13  ;;  %p1976_p1 = scmp.ge.s32.totalorder %s2356_s10, 4 }
  0x17   : > { %2052 = dma.hbm_to_vmem [thread:$0]  (!%p2050_p0), %s246_s22, 2048, %s248_s24, [#allocation5], %s2359_s28, %s2359_s28, %s2360_s11  }
  0x18   : > { %2055 = dma.vmem_to_smem (!%p2050_p0), %s270_s27, 32, %s2361_s13, [#allocation7]  }
  0x19   : > { %276 = sbr.rel (%p1976_p1) target bundleno = 42 (0x2a), region = 44 }
  0x1e   : > { %279 = sbr.rel (!%p2451_p5) target bundleno = 42 (0x2a), region = 48  ;;  %s281_s14 = sand.u32 (%p2451_p5), 1, %s2352_s9  }
  0x1f   : > { %s1978_s20 = sshll.u32 (%p2451_p5), %s2356_s10, 3  ;;  %s1977_s21 = sshll.u32 (%p2451_p5), %s281_s14, 6 }
  0x20   : > { %s285_s26 = scalar_lea.vmem (%p2451_p5), %s3524_s0, %s1978_s20  ;;  %s283_s22 = scalar_lea.vmem (%p2451_p5), [#allocation3], %s1977_s21 }
  0x21   : > { %v328_v0 = vld [vmem:[%s285_s26] sm:$0xff] (%p2451_p5) }
  0x22   : > { %v330_v1 = vld [vmem:[%s285_s26 + $0x20] sm:$0xff] (%p2451_p5)  ;;  %329 = vst [vmem:[%s283_s22] sm:$0xff] (%p2451_p5), %v328_v0 }
  0x23   : > { %v332_v2 = vld [vmem:[%s285_s26 + $0x40] sm:$0xff]  ;;  %331 = vst [vmem:[%s283_s22 + $0x8] sm:$0xff] %v330_v1 }
  0x24   : > { %v334_v3 = vld [vmem:[%s285_s26 + $0x60] sm:$0xff]  ;;  %333 = vst [vmem:[%s283_s22 + $0x10] sm:$0xff] %v332_v2 }
  0x25   : > { %v336_v4 = vld [vmem:[%s285_s26 + $0x80] sm:$0xff]  ;;  %335 = vst [vmem:[%s283_s22 + $0x18] sm:$0xff] %v334_v3 }
  0x26   : > { %v338_v5 = vld [vmem:[%s285_s26 + $0xa0] sm:$0xff]  ;;  %337 = vst [vmem:[%s283_s22 + $0x20] sm:$0xff] %v336_v4 }
  0x27   : > { %v340_v6 = vld [vmem:[%s285_s26 + $0xc0] sm:$0xff]  ;;  %339 = vst [vmem:[%s283_s22 + $0x28] sm:$0xff] %v338_v5 }
  0x28   : > { %v342_v7 = vld [vmem:[%s285_s26 + $0xe0] sm:$0xff]  ;;  %341 = vst [vmem:[%s283_s22 + $0x30] sm:$0xff] %v340_v6 }
  0x29   : > { %343 = vst [vmem:[%s283_s22 + $0x38] sm:$0xff] %v342_v7 }
  0x2a PF: > { %352 = sbr.rel (%p2466_p12) target bundleno = 665 (0x299), region = 86 }
  0x2f   : > { %s2491_s16 = sand.u32 1, %s2348_s30  }
  0x30   : > { %s1980_s24 = sshll.u32 %s2491_s16, 6 }
  0x31   : > { %s2494_s27 = scalar_lea.vmem [#allocation3], %s1980_s24 }
  0x32   : > { %2331 = dma.done.wait (%p2060_p11), [#allocation5], 2048  }
  0x33   : > { %2333 = vsyncadd (%p2060_p11), [#allocation5], 4294965248 }
  0x34   : > { %2335 = dma.done.wait (%p2060_p11), [#allocation7], 32  }
  0x35   : > { %2337 = vsyncadd (%p2060_p11), [#allocation7], 4294967264 }
  0x36   : > { %371 = sfence }
  0x37   : > { %v399_v8 = vld [vmem:[%s2494_s27] sm:$0xff]  ;;  %v400_v9 = vld [vmem:[%s2494_s27 + $0x8] sm:$0xff]  ;;  %v401_v10 = vld [vmem:[%s2494_s27 + $0x10] sm:$0xff]  ;;  %vm640_vm0 = vcmask 64512   ;;  %v441_v11 = vlaneseq  ;;  %s2016_s20 = sld [smem:[#allocation8 + $0x1]]  ;;  %vm1344_vm14 = vcmask 261120  }
  0x38   : > { %668 = vmatpush.msra.mxu0 %v399_v8  ;;  %709 = vmatpush.msra.mxu1 %v400_v9  ;;  %v402_v12 = vld [vmem:[%s2494_s27 + $0x18] sm:$0xff]  ;;  %v407_v13 = vld [vmem:[%s3525_s1] sm:$0xff]  ;;  %v408_v22 = vld [vmem:[%s3525_s1 + $0x8] sm:$0xff]  ;;  %s969_s21 = sld [smem:[#allocation8]]  ;;  %s1868_s19 = scalar_lea.sflag [#allocation6], %s2491_s16 }
  0x39   : > { %v411_v14 = vld [vmem:[%s3525_s1 + $0x20] sm:$0xff]  ;;  %750 = vmatpush.msra.mxu2 %v401_v10  ;;  %791 = vmatpush.msra.mxu3 %v402_v12  ;;  %v2520_v17 = vshrl.u32 %v441_v11, 7  ;;  %v412_v23 = vld [vmem:[%s3525_s1 + $0x28] sm:$0xff]  ;;  %v409_v28 = vld [vmem:[%s3525_s1 + $0x10] sm:$0xff]  ;;  %s2034_s11 = sld [smem:[#allocation8 + $0x81]] }
  0x3a   : > { %v415_v15 = vld [vmem:[%s3525_s1 + $0x40] sm:$0xff]  ;;  %1984 = vmatmul.msk.f32.vlgmr.msra.gmra.mxu0 %vm640_vm0, %v407_v13  ;;  %1988 = vmatmul.msk.f32.vlgmr.msra.gmra.mxu1 %vm640_vm0, %v411_v14  ;;  %v416_v24 = vld [vmem:[%s3525_s1 + $0x48] sm:$0xff]  ;;  %v413_v29 = vld [vmem:[%s3525_s1 + $0x30] sm:$0xff]  ;;  %s2033_s13 = sld [smem:[#allocation8 + $0x80]] }
  0x3b   : > { %v419_v16 = vld [vmem:[%s3525_s1 + $0x60] sm:$0xff]  ;;  %1992 = vmatmul.msk.f32.vlgmr.msra.gmra.mxu2 %vm640_vm0, %v415_v15  ;;  %v2527_v18 = vadd.s32 24, %v2520_v17  ;;  %v2530_v19 = vadd.s32 16, %v2520_v17  ;;  %v420_v25 = vld [vmem:[%s3525_s1 + $0x68] sm:$0xff]  ;;  %v417_v30 = vld [vmem:[%s3525_s1 + $0x50] sm:$0xff]  ;;  %v2575_v32 = vadd.s32 8, %v2520_v17 }
  0x3c   : > { %1996 = vmatmul.msk.f32.vlgmr.msra.gmra.mxu3 %vm640_vm0, %v419_v16  ;;  %v2538_v20 = vld [vmem:[%s3526_s2] sm:$0xff]  ;;  %v421_v31 = vld [vmem:[%s3525_s1 + $0x70] sm:$0xff]  ;;  %v410_v34 = vld [vmem:[%s3525_s1 + $0x18] sm:$0xff]  ;;  %s3445_s14 = sld [smem:[#allocation2]] }
  0x3d   : > { %2105 = vset.pattern.permute.xlu2 %v2527_v18  ;;  %2103 = vset.pattern.permute.xlu0 %v2527_v18  ;;  %v403_v21 = vld [vmem:[%s2494_s27 + $0x20] sm:$0xff]  ;;  %v2554_v26 = vperm.slane %v2538_v20, 2  ;;  %v440_v27 = vperm.slane %v2538_v20, 0  ;;  %v465_v33 = vperm.slane %v2538_v20, 1  ;;  %v414_v35 = vld [vmem:[%s3525_s1 + $0x38] sm:$0xff]  ;;  %v404_v38 = vld [vmem:[%s2494_s27 + $0x28] sm:$0xff] }
  0x3e   : > { %2104 = vset.pattern.permute.xlu1 %v2530_v19  ;;  %832 = vmatpush.msrb.mxu0 %v403_v21  ;;  %v418_v36 = vld [vmem:[%s3525_s1 + $0x58] sm:$0xff]  ;;  %v405_v39 = vld [vmem:[%s2494_s27 + $0x30] sm:$0xff]  ;;  %v423_v40 = vld [vmem:[%s3525_s1 + $0x80] sm:$0xff]  ;;  %v515_v46 = vperm.slane %v2538_v20, 3  ;;  %v540_v50 = vperm.slane %v2538_v20, 4  ;;  %v590_v56 = vperm.slane %v2538_v20, 6 }
  0x3f   : > { %v422_v37 = vld [vmem:[%s3525_s1 + $0x78] sm:$0xff]  ;;  %873 = vmatpush.msrb.mxu1 %v404_v38  ;;  %914 = vmatpush.msrb.mxu2 %v405_v39  ;;  %v427_v41 = vld [vmem:[%s3525_s1 + $0xa0] sm:$0xff]  ;;  %v424_v43 = vld [vmem:[%s3525_s1 + $0x88] sm:$0xff]  ;;  %v565_v60 = vperm.slane %v2538_v20, 5  ;;  %v615_v3 = vperm.slane %v2538_v20, 7 }
  0x40   : > { %v431_v42 = vld [vmem:[%s3525_s1 + $0xc0] sm:$0xff]  ;;  %v428_v44 = vld [vmem:[%s3525_s1 + $0xa8] sm:$0xff]  ;;  %v425_v47 = vld [vmem:[%s3525_s1 + $0x90] sm:$0xff] }
  0x41   : > { %v432_v45 = vld [vmem:[%s3525_s1 + $0xc8] sm:$0xff]  ;;  %v429_v48 = vld [vmem:[%s3525_s1 + $0xb0] sm:$0xff]  ;;  %v426_v51 = vld [vmem:[%s3525_s1 + $0x98] sm:$0xff] }
  0x42   : > { %1985 = vmatmul.msk.f32.gmra.mxu0 %vm640_vm0, %v408_v22  ;;  %1989 = vmatmul.msk.f32.gmra.mxu1 %vm640_vm0, %v412_v23  ;;  %v433_v49 = vld [vmem:[%s3525_s1 + $0xd0] sm:$0xff]  ;;  %v430_v52 = vld [vmem:[%s3525_s1 + $0xb8] sm:$0xff]  ;;  %v435_v55 = vld [vmem:[%s3525_s1 + $0xe0] sm:$0xff] }
  0x43   : > { %1993 = vmatmul.msk.f32.gmra.mxu2 %vm640_vm0, %v416_v24  ;;  %v434_v53 = vld [vmem:[%s3525_s1 + $0xd8] sm:$0xff]  ;;  %v436_v57 = vld [vmem:[%s3525_s1 + $0xe8] sm:$0xff]  ;;  %v437_v58 = vld [vmem:[%s3525_s1 + $0xf0] sm:$0xff] }
  0x44   : > { %1997 = vmatmul.msk.f32.gmra.mxu3 %vm640_vm0, %v420_v25  ;;  %v406_v54 = vld [vmem:[%s2494_s27 + $0x38] sm:$0xff] }
  0x45   : > { %513 = vperm.xlu2 %2105, %v2554_v26   ;;  %463 = vperm.xlu0 %2103, %v440_v27   ;;  %v438_v59 = vld [vmem:[%s3525_s1 + $0xf8] sm:$0xff] }
  0x46   : > { %457 = vperm.xlu1 %2104, %v440_v27   ;;  %955 = vmatpush.msrb.mxu3 %v406_v54 }
  0x4a   : > { %1986 = vmatmul.msk.f32.gmra.mxu0 %vm640_vm0, %v409_v28  ;;  %1990 = vmatmul.msk.f32.gmra.mxu1 %vm640_vm0, %v413_v29 }
  0x4b   : > { %1994 = vmatmul.msk.f32.gmra.mxu2 %vm640_vm0, %v417_v30 }
  0x4c   : > { %1998 = vmatmul.msk.f32.gmra.mxu3 %vm640_vm0, %v421_v31 }
  0x4d   : > { %2106 = vset.pattern.permute.xlu2 %v2575_v32  ;;  %488 = vperm.xlu0 %2103, %v465_v33  }
  0x4e   : > { %482 = vperm.xlu1 %2104, %v465_v33  }
  0x52   : > { %1987 = vmatmul.msk.f32.gmra.mxu0 %vm640_vm0, %v410_v34  ;;  %1991 = vmatmul.msk.f32.gmra.mxu1 %vm640_vm0, %v414_v35 }
  0x53   : > { %1995 = vmatmul.msk.f32.gmra.mxu2 %vm640_vm0, %v418_v36 }
  0x54   : > { %1999 = vmatmul.msk.f32.gmra.mxu3 %vm640_vm0, %v422_v37 }
  0x55   : > { %451 = vperm.xlu2 %2106, %v440_v27   ;;  %2107 = vset.pattern.permute.xlu0 %v2575_v32 }
  0x56   : > { %507 = vperm.xlu1 %2104, %v2554_v26  }
  0x5a   : > { %2000 = vmatmul.msk.f32.vlgmr.msrb.gmra.mxu0 %vm640_vm0, %v423_v40  ;;  %2004 = vmatmul.msk.f32.vlgmr.msrb.gmra.mxu1 %vm640_vm0, %v427_v41 }
  0x5b   : > { %2008 = vmatmul.msk.f32.vlgmr.msrb.gmra.mxu2 %vm640_vm0, %v431_v42  ;;  %v2362_v42 = vmov 8.0  }
  0x5c   : > { %2012 = vmatmul.msk.f32.vlgmr.msrb.gmra.mxu3 %vm640_vm0, %v435_v55  ;;  %2131 = vrcp.f32 %v2362_v42 }
  0x5d   : > { %2108 = vset.pattern.permute.xlu2 %v2527_v18  ;;  %476 = vperm.xlu0 %2107, %v465_v33  }
  0x5e   : > { %2109 = vset.pattern.permute.xlu1 %v2520_v17 }
  0x62   : > { %2001 = vmatmul.msk.f32.gmra.mxu0 %vm640_vm0, %v424_v43  ;;  %2005 = vmatmul.msk.f32.gmra.mxu1 %vm640_vm0, %v428_v44 }
  0x63   : > { %2009 = vmatmul.msk.f32.gmra.mxu2 %vm640_vm0, %v432_v45 }
  0x64   : > { %2013 = vmatmul.msk.f32.gmra.mxu3 %vm640_vm0, %v436_v57 }
  0x65   : > { %538 = vperm.xlu2 %2108, %v515_v46   ;;  %501 = vperm.xlu0 %2107, %v2554_v26  }
  0x66   : > { %445 = vperm.xlu1 %2109, %v440_v27  }
  0x6a   : > { %2002 = vmatmul.msk.f32.gmra.mxu0 %vm640_vm0, %v425_v47  ;;  %2006 = vmatmul.msk.f32.gmra.mxu1 %vm640_vm0, %v429_v48 }
  0x6b   : > { %2010 = vmatmul.msk.f32.gmra.mxu2 %vm640_vm0, %v433_v49 }
  0x6c   : > { %2014 = vmatmul.msk.f32.gmra.mxu3 %vm640_vm0, %v437_v58 }
  0x6d   : > { %2110 = vset.pattern.permute.xlu2 %v2520_v17  ;;  %551 = vperm.xlu0 %2107, %v540_v50  }
  0x6e   : > { %2111 = vset.pattern.permute.xlu1 %v2530_v19 }
  0x72   : > { %2003 = vmatmul.msk.f32.gmra.mxu0 %vm640_vm0, %v426_v51  ;;  %2007 = vmatmul.msk.f32.gmra.mxu1 %vm640_vm0, %v430_v52 }
  0x73   : > { %2011 = vmatmul.msk.f32.gmra.mxu2 %vm640_vm0, %v434_v53 }
  0x74   : > { %2015 = vmatmul.msk.f32.gmra.mxu3 %vm640_vm0, %v438_v59 }
  0x75   : > { %470 = vperm.xlu2 %2110, %v465_v33   ;;  %2121 = vset.pattern.permute.xlu0 %v2530_v19 }
  0x76   : > { %532 = vperm.xlu1 %2111, %v515_v46  }
  0x7d   : > { %2112 = vset.pattern.permute.xlu2 %v2527_v18  ;;  %607 = vperm.xlu0 %2121, %v590_v56  }
  0x7e   : > { %2113 = vset.pattern.permute.xlu1 %v2575_v32 }
  0x85   : > { %563 = vperm.xlu2 %2112, %v540_v50   ;;  %2122 = vset.pattern.permute.xlu0 %v2520_v17 }
  0x86   : > { %526 = vperm.xlu1 %2113, %v515_v46  }
  0x8d   : > { %2114 = vset.pattern.permute.xlu2 %v2530_v19  ;;  %495 = vperm.xlu0 %2122, %v2554_v26  }
  0x8e   : > { %2115 = vset.pattern.permute.xlu1 %v2527_v18 }
  0x95   : > { %557 = vperm.xlu2 %2114, %v540_v50   ;;  %595 = vperm.xlu0 %2122, %v590_v56  }
  0x96   : > { %588 = vperm.xlu1 %2115, %v565_v60  }
  0x9d   : > { %2116 = vset.pattern.permute.xlu2 %v2520_v17 }
  0x9e   : > { %2117 = vset.pattern.permute.xlu1 %v2530_v19 }
  0x9f   : > { %v2688_v61 = vpop.permute.xlu2 %513 }
  0xa5   : > { %520 = vperm.xlu2 %2116, %v515_v46   ;;  %v2132_v46 = vpop.eup %2131 }
  0xa6   : > { %582 = vperm.xlu1 %2117, %v565_v60   ;;  %v1000_v53 = vmul.f32 8.0, %v2132_v46  ;;  %vm1004_vm1 = vweird.f32 %v2132_v46 }
  0xa8   : > { %v1001_v58 = vsub.f32 1.0, %v1000_v53 }
  0xad   : > { %2118 = vset.pattern.permute.xlu2 %v2527_v18 }
  0xae   : > { %2119 = vset.pattern.permute.xlu1 %v2520_v17 }
  0xaf   : > { %v452_v0 = vpop.permute.xlu2 %451 }
  0xb5   : > { %613 = vperm.xlu2 %2118, %v590_v56  }
  0xb6   : > { %545 = vperm.xlu1 %2119, %v540_v50  }
  0xb7   : > { %v670_v62 = vpop.f32.mrf.mxu0  ;;  %v711_v6 = vpop.f32.mrf.mxu1 }
  0xb8   : > { %v2690_v63 = vpop.permute.xlu1 %457  ;;  %v464_v20 = vpop.permute.xlu0 %463 }
  0xbd   : > { %2120 = vset.pattern.permute.xlu2 %v2575_v32 }
  0xbe   : > { %2123 = vset.pattern.permute.xlu1 %v2527_v18  ;;  %v2710_v12 = vpop.f32.mrf.mxu2 }
  0xbf   : > { %v673_v1 = vpop.f32.mrf.mxu0  ;;  %v2699_v5 = vpop.permute.xlu2 %538 }
  0xc0   : > { %v2694_v2 = vadd.f32 %v673_v1, %v452_v0  ;;  %v2697_v4 = vpop.permute.xlu1 %482  ;;  %v2713_v13 = vpop.f32.mrf.mxu3 }
  0xc1   : > { %v2715_v14 = vpop.f32.mrf.mxu1  ;;  %v489_v25 = vpop.permute.xlu0 %488 }
  0xc2   : > { %3558 = vst [vmem:[#allocation13_spill] sm:$0xff] %v2694_v2 }
  0xc5   : > { %576 = vperm.xlu2 %2120, %v565_v60  }
  0xc6   : > { %638 = vperm.xlu1 %2123, %v615_v3   ;;  %v2717_v15 = vpop.f32.mrf.mxu2 }
  0xc7   : > { %v676_v18 = vpop.f32.mrf.mxu0 }
  0xc8   : > { %v2703_v7 = vpop.permute.xlu1 %507  ;;  %v2719_v16 = vpop.f32.mrf.mxu3 }
  0xc9   : > { %v717_v21 = vpop.f32.mrf.mxu1 }
  0xcd   : > { %2124 = vset.pattern.permute.xlu2 %v2520_v17 }
  0xce   : > { %2125 = vset.pattern.permute.xlu1 %v2575_v32  ;;  %v758_v22 = vpop.f32.mrf.mxu2 }
  0xcf   : > { %v471_v8 = vpop.permute.xlu2 %470  ;;  %v679_v23 = vpop.f32.mrf.mxu0 }
  0xd0   : > { %v2705_v9 = vadd.f32 %v711_v6, %v471_v8  ;;  %v2727_v32 = vpop.permute.xlu0 %476  ;;  %v2745_v47 = vadd.f32 %v679_v23, %v464_v20  ;;  %v2765_v8 = vadd.f32 %v676_v18, %v2690_v63  ;;  %v1002_v20 = vmul.f32 %v2132_v46, %v1001_v58 }
  0xd1   : > { %v720_v24 = vpop.f32.mrf.mxu1 }
  0xd2   : > { %3559 = vst [vmem:[#allocation14_spill] sm:$0xff] %v2705_v9  ;;  %v2747_v48 = vadd.f32 %v720_v24, %v489_v25  ;;  %v2774_v25 = vadd.f32 %v758_v22, %v2703_v7 }
  0xd4   : > { %v992_v54 = vadd.f32 %v2747_v48, %v2745_v47 }
  0xd5   : > { %570 = vperm.xlu2 %2124, %v565_v60  }
  0xd6   : > { %601 = vperm.xlu1 %2125, %v590_v56   ;;  %v761_v26 = vpop.f32.mrf.mxu2 }
  0xd7   : > { %v2721_v28 = vpop.f32.mrf.mxu0  ;;  %v2754_v55 = vadd.f32 %v761_v26, %v2688_v61  ;;  %v2768_v61 = vadd.f32 %v717_v21, %v2697_v4  ;;  %v1003_v21 = vadd.f32 %v2132_v46, %v1002_v20 }
  0xd8   : > { %v446_v10 = vpop.permute.xlu1 %445  ;;  %v2739_v39 = vpop.permute.xlu0 %501 }
  0xd9   : > { %v2707_v11 = vadd.f32 %v670_v62, %v446_v10  ;;  %v2723_v30 = vpop.f32.mrf.mxu1  ;;  %v993_v59 = vadd.f32 %v992_v54, %v2754_v55  ;;  %v985_v63 = vadd.f32 %v2768_v61, %v2765_v8 }
  0xdb   : > { %3560 = vst [vmem:[#allocation15_spill] sm:$0xff] %v2707_v11 }
  0xdd   : > { %2126 = vset.pattern.permute.xlu2 %v2530_v19  ;;  %v799_v19 = vpop.f32.mrf.mxu3 }
  0xde   : > { %626 = vperm.xlu1 %2125, %v615_v3   ;;  %v2725_v31 = vpop.f32.mrf.mxu2 }
  0xdf   : > { %v2733_v36 = vpop.f32.mrf.mxu0 }
  0xe0   : > { %v2749_v49 = vpop.permute.xlu0 %551 }
  0xe1   : > { %v2735_v37 = vpop.f32.mrf.mxu1 }
  0xe5   : > { %632 = vperm.xlu2 %2126, %v615_v3   ;;  %v802_v27 = vpop.f32.mrf.mxu3 }
  0xe6   : > { %v2737_v38 = vpop.f32.mrf.mxu2  ;;  %v2760_v1 = vadd.f32 %v802_v27, %v2699_v5 }
  0xe7   : > { %v840_v44 = vpop.f32.mrf.mxu0 }
  0xe8   : > { %v533_v29 = vpop.permute.xlu1 %532  ;;  %v994_v23 = vadd.f32 %v993_v59, %v2760_v1 }
  0xe9   : > { %v881_v45 = vpop.f32.mrf.mxu1  ;;  %v2781_v18 = vadd.f32 %v799_v19, %v533_v29  ;;  %v2793_v19 = vsel %vm1004_vm1, %v2132_v46, %v1003_v21 }
  0xea   : > { %3564 = vst [vmem:[#allocation19_spill] sm:$0xff] %v2793_v19 }
  0xed   : > { %2127 = vset.pattern.permute.xlu2 %v2520_v17  ;;  %v564_v17 = vpop.permute.xlu2 %563  ;;  %v2731_v35 = vpop.f32.mrf.mxu3 }
  0xee   : > { %v922_v50 = vpop.f32.mrf.mxu2 }
  0xef   : > { %v843_v57 = vpop.f32.mrf.mxu0  ;;  %v608_v6 = vpop.permute.xlu0 %607 }
  0xf0   : > { %v2801_v59 = vadd.f32 %v922_v50, %v608_v6 }
  0xf1   : > { %v884_v60 = vpop.f32.mrf.mxu1 }
  0xf2   : > { %3566 = vst [vmem:[#allocation21_spill] sm:$0xff] %v2801_v59 }
  0xf5   : > { %620 = vperm.xlu2 %2127, %v615_v3   ;;  %v558_v33 = vpop.permute.xlu2 %557  ;;  %v2743_v43 = vpop.f32.mrf.mxu3  ;;  %v2762_v3 = vadd.f32 %v843_v57, %v564_v17  ;;  %v986_v17 = vadd.f32 %v985_v63, %v2774_v25 }
  0xf6   : > { %v925_v10 = vpop.f32.mrf.mxu2 }
  0xf7   : > { %v995_v5 = vadd.f32 %v994_v23, %v2762_v3  ;;  %v987_v53 = vadd.f32 %v986_v17, %v2781_v18 }
  0xf8   : > { %v2729_v34 = vpop.permute.xlu1 %526 }
  0xfd   : > { %v963_v56 = vpop.f32.mrf.mxu3 }
  0xff   : > { %v2741_v40 = vpop.permute.xlu2 %520  ;;  %v496_v29 = vpop.permute.xlu0 %495 }
 0x105   : > { %v966_v4 = vpop.f32.mrf.mxu3 }
 0x108   : > { %v589_v41 = vpop.permute.xlu1 %588 }
 0x109   : > { %v2771_v24 = vadd.f32 %v884_v60, %v589_v41  ;;  %v2785_v41 = vadd.f32 %v840_v44, %v558_v33  ;;  %v2799_v44 = vadd.f32 %v2710_v12, %v496_v29  ;;  %v971_v12 = vadd.f32 %v2705_v9, %v2707_v11 }
 0x10b   : > { %3561 = vst [vmem:[#allocation16_spill] sm:$0xff] %v2771_v24  ;;  %v996_v27 = vadd.f32 %v995_v5, %v2771_v24  ;;  %v988_v58 = vadd.f32 %v987_v53, %v2785_v41  ;;  %v2828_v5 = vadd.f32 %v2717_v15, %v2739_v39  ;;  %v2847_v39 = vadd.f32 %v2719_v16, %v2729_v34  ;;  %v596_v16 = vpop.permute.xlu0 %595 }
 0x10c   : > { %3562 = vst [vmem:[#allocation17_spill] sm:$0xff] %v2785_v41 }
 0x10d   : > { %3565 = vst [vmem:[#allocation20_spill] sm:$0xff] %v2799_v44 }
 0x10e   : > { %3568 = vst [vmem:[#allocation23_spill] sm:$0xff] %v2828_v5 }
 0x10f   : > { %v614_v51 = vpop.permute.xlu2 %613  ;;  %3571 = vst [vmem:[#allocation26_spill] sm:$0xff] %v2847_v39 }
 0x110   : > { %v2777_v26 = vadd.f32 %v925_v10, %v614_v51 }
 0x112   : > { %v997_v42 = vadd.f32 %v996_v27, %v2777_v26 }
 0x118   : > { %v583_v52 = vpop.permute.xlu1 %582 }
 0x119   : > { %v2791_v54 = vadd.f32 %v881_v45, %v583_v52  ;;  %v2815_v52 = vadd.f32 %v2715_v14, %v2727_v32  ;;  %v972_v14 = vadd.f32 %v971_v12, %v2799_v44  ;;  %v2833_v32 = vadd.f32 %v2713_v13, %v2741_v40 }
 0x11b   : > { %3563 = vst [vmem:[#allocation18_spill] sm:$0xff] %v2791_v54  ;;  %v989_v60 = vadd.f32 %v988_v58, %v2791_v54  ;;  %v978_v15 = vadd.f32 %v2815_v52, %v2694_v2  ;;  %v973_v29 = vadd.f32 %v972_v14, %v2833_v32 }
 0x11c   : > { %3567 = vst [vmem:[#allocation22_spill] sm:$0xff] %v2815_v52 }
 0x11d   : > { %3569 = vst [vmem:[#allocation24_spill] sm:$0xff] %v2833_v32  ;;  %v990_v63 = vadd.f32 %v989_v60, %v2801_v59  ;;  %v979_v53 = vadd.f32 %v978_v15, %v2828_v5  ;;  %v2871_v60 = vadd.f32 %v2733_v36, %v2749_v49  ;;  %v2891_v49 = vadd.f32 %v2725_v31, %v596_v16 }
 0x11f   : > { %v2757_v62 = vpop.permute.xlu2 %576  ;;  %3574 = vst [vmem:[#allocation29_spill] sm:$0xff] %v2871_v60  ;;  %v980_v12 = vadd.f32 %v979_v53, %v2847_v39 }
 0x120   : > { %v2888_v36 = vadd.f32 %v2735_v37, %v2757_v62  ;;  %3576 = vst [vmem:[#allocation31_spill] sm:$0xff] %v2891_v49 }
 0x121   : > { %v981_v31 = vadd.f32 %v980_v12, %v2871_v60 }
 0x122   : > { %3575 = vst [vmem:[#allocation30_spill] sm:$0xff] %v2888_v36 }
 0x128   : > { %v546_v0 = vpop.permute.xlu1 %545 }
 0x129   : > { %v2850_v13 = vadd.f32 %v2721_v28, %v546_v0 }
 0x12b   : > { %3572 = vst [vmem:[#allocation27_spill] sm:$0xff] %v2850_v13 }
 0x12f   : > { %v571_v7 = vpop.permute.xlu2 %570 }
 0x138   : > { %v639_v22 = vpop.permute.xlu1 %638 }
 0x139   : > { %v2788_v51 = vadd.f32 %v966_v4, %v639_v22 }
 0x13b   : > { %v998_v57 = vadd.f32 %v997_v42, %v2788_v51 }
 0x13d   : > { %v1009_v33 = vmul.f32 %v2793_v19, %v998_v57  ;;  %v2861_v57 = vadd.f32 %v2723_v30, %v571_v7 }
 0x13f   : > { %v2805_v10 = vsub.f32 %v2745_v47, %v1009_v33  ;;  %v2808_v45 = vsub.f32 %v2747_v48, %v1009_v33  ;;  %v2811_v46 = vsub.f32 %v2754_v55, %v1009_v33  ;;  %v633_v50 = vpop.permute.xlu2 %632  ;;  %v2820_v6 = vsub.f32 %v2760_v1, %v1009_v33  ;;  %3573 = vst [vmem:[#allocation28_spill] sm:$0xff] %v2861_v57 }
 0x140   : > { %v2837_v4 = vsub.f32 %v2762_v3, %v1009_v33  ;;  %v2841_v17 = vadd.f32 %v963_v56, %v633_v50  ;;  %v2853_v40 = vsub.f32 %v2771_v24, %v1009_v33  ;;  %v2864_v28 = vsub.f32 %v2777_v26, %v1009_v33 }
 0x141   : > { %v1045_v20 = vmul.f32 %v2805_v10, %v2805_v10  ;;  %v1049_v23 = vmul.f32 %v2808_v45, %v2808_v45  ;;  %v1053_v21 = vmul.f32 %v2811_v46, %v2811_v46  ;;  %v1057_v22 = vmul.f32 %v2820_v6, %v2820_v6 }
 0x142   : > { %3570 = vst [vmem:[#allocation25_spill] sm:$0xff] %v2841_v17  ;;  %v991_v56 = vadd.f32 %v990_v63, %v2841_v17  ;;  %v1061_v34 = vmul.f32 %v2837_v4, %v2837_v4  ;;  %v974_v50 = vadd.f32 %v973_v29, %v2850_v13  ;;  %v2876_v30 = vsub.f32 %v2788_v51, %v1009_v33 }
 0x143   : > { %v1095_v27 = vadd.f32 %v1049_v23, %v1045_v20  ;;  %v1065_v20 = vmul.f32 %v2853_v40, %v2853_v40 }
 0x144   : > { %v1008_v58 = vmul.f32 %v2793_v19, %v991_v56  ;;  %v975_v33 = vadd.f32 %v974_v50, %v2861_v57  ;;  %v1073_v62 = vmul.f32 %v2876_v30, %v2876_v30 }
 0x145   : > { %v1096_v42 = vadd.f32 %v1095_v27, %v1053_v21  ;;  %v1069_v27 = vmul.f32 %v2864_v28, %v2864_v28 }
 0x146   : > { %v2881_v14 = vsub.f32 %v2765_v8, %v1008_v58  ;;  %v2884_v63 = vsub.f32 %v2768_v61, %v1008_v58  ;;  %v2895_v21 = vsub.f32 %v2774_v25, %v1008_v58  ;;  %v2904_v37 = vsub.f32 %v2781_v18, %v1008_v58 }
 0x147   : > { %v1097_v0 = vadd.f32 %v1096_v42, %v1057_v22  ;;  %v2910_v53 = vsub.f32 %v2785_v41, %v1008_v58  ;;  %v976_v12 = vadd.f32 %v975_v33, %v2891_v49 }
 0x148   : > { %v602_v7 = vpop.permute.xlu1 %601  ;;  %v1044_v22 = vmul.f32 %v2881_v14, %v2881_v14  ;;  %v1048_v42 = vmul.f32 %v2884_v63, %v2884_v63  ;;  %v1052_v29 = vmul.f32 %v2895_v21, %v2895_v21 }
 0x149   : > { %v1098_v23 = vadd.f32 %v1097_v0, %v1061_v34  ;;  %v2915_v34 = vadd.f32 %v2737_v38, %v602_v7  ;;  %v982_v0 = vadd.f32 %v981_v31, %v2888_v36  ;;  %v2928_v38 = vsub.f32 %v2801_v59, %v1008_v58 }
 0x14a   : > { %v1088_v16 = vadd.f32 %v1048_v42, %v1044_v22  ;;  %v1060_v33 = vmul.f32 %v2910_v53, %v2910_v53 }
 0x14b   : > { %v1099_v15 = vadd.f32 %v1098_v23, %v1065_v20  ;;  %v2920_v23 = vsub.f32 %v2791_v54, %v1008_v58  ;;  %v983_v7 = vadd.f32 %v982_v0, %v2915_v34 }
 0x14d   : > { %v1100_v56 = vadd.f32 %v1099_v15, %v1069_v27  ;;  %v1056_v27 = vmul.f32 %v2904_v37, %v2904_v37  ;;  %v1089_v15 = vadd.f32 %v1088_v16, %v1052_v29 }
 0x14f   : > { %v1101_v50 = vadd.f32 %v1100_v56, %v1073_v62  ;;  %v621_v20 = vpop.permute.xlu2 %620  ;;  %v1090_v62 = vadd.f32 %v1089_v15, %v1056_v27 }
 0x150   : > { %v2925_v41 = vadd.f32 %v2731_v35, %v621_v20  ;;  %v627_v22 = vpop.permute.xlu1 %626  ;;  %v2938_v35 = vsub.f32 %v2841_v17, %v1008_v58 }
 0x151   : > { %v1105_v42 = vmul.f32 0.14285715, %v1101_v50  ;;  %v2932_v31 = vadd.f32 %v2743_v43, %v627_v22  ;;  %v1064_v50 = vmul.f32 %v2920_v23, %v2920_v23  ;;  %v1091_v20 = vadd.f32 %v1090_v62, %v1060_v33 }
 0x152   : > { %3577 = vst [vmem:[#allocation32_spill] sm:$0xff] %v2925_v41  ;;  %v977_v56 = vadd.f32 %v976_v12, %v2925_v41  ;;  %v1068_v43 = vmul.f32 %v2928_v38, %v2928_v38  ;;  %v1072_v15 = vmul.f32 %v2938_v35, %v2938_v35 }
 0x153   : > { %v1109_v29 = vadd.f32 1e-09, %v1105_v42  ;;  %v984_v16 = vadd.f32 %v983_v7, %v2932_v31  ;;  %v1092_v22 = vadd.f32 %v1091_v20, %v1064_v50 }
 0x154   : > { %v1006_v0 = vmul.f32 %v2793_v19, %v977_v56 }
 0x155   : > { %2133 = vrsqrt.f32 %v1109_v29  ;;  %v1007_v42 = vmul.f32 %v2793_v19, %v984_v16  ;;  %v1093_v7 = vadd.f32 %v1092_v22, %v1068_v43  ;;  %vm1146_vm3 = vweird.f32 %v1109_v29 }
 0x156   : > { %v2947_v27 = vsub.f32 %v2707_v11, %v1006_v0  ;;  %v2950_v12 = vsub.f32 %v2705_v9, %v1006_v0  ;;  %v2953_v58 = vsub.f32 %v2799_v44, %v1006_v0  ;;  %v2959_v33 = vsub.f32 %v2833_v32, %v1006_v0 }
 0x157   : > { %v2966_v50 = vsub.f32 %v2850_v13, %v1006_v0  ;;  %v1094_v20 = vadd.f32 %v1093_v7, %v1072_v15  ;;  %v2971_v16 = vsub.f32 %v2861_v57, %v1006_v0  ;;  %v2974_v43 = vsub.f32 %v2694_v2, %v1007_v42 }
 0x158   : > { %v1042_v62 = vmul.f32 %v2947_v27, %v2947_v27  ;;  %v1046_v56 = vmul.f32 %v2950_v12, %v2950_v12  ;;  %v1050_v17 = vmul.f32 %v2953_v58, %v2953_v58  ;;  %v2977_v22 = vsub.f32 %v2815_v52, %v1007_v42 }
 0x159   : > { %v1104_v24 = vmul.f32 0.14285715, %v1094_v20  ;;  %v1054_v13 = vmul.f32 %v2959_v33, %v2959_v33  ;;  %v2982_v7 = vsub.f32 %v2891_v49, %v1006_v0  ;;  %v1043_v20 = vmul.f32 %v2974_v43, %v2974_v43 }
 0x15a   : > { %v1074_v59 = vadd.f32 %v1046_v56, %v1042_v62  ;;  %v1058_v62 = vmul.f32 %v2966_v50, %v2966_v50  ;;  %v2987_v56 = vsub.f32 %v2828_v5, %v1007_v42  ;;  %v2994_v9 = vsub.f32 %v2925_v41, %v1006_v0 }
 0x15b   : > { %v2134_v54 = vpop.eup %2133  ;;  %v2989_v32 = vadd.f32 1e-09, %v1104_v24  ;;  %v1062_v24 = vmul.f32 %v2971_v16, %v2971_v16  ;;  %v3024_v11 = vsub.f32 %v2932_v31, %v1007_v42 }
 0x15c   : > { %v1141_v19 = vmul.f32 %v2134_v54, %v1109_v29  ;;  %v1075_v15 = vadd.f32 %v1074_v59, %v1050_v17  ;;  %v2997_v59 = vsub.f32 %v2847_v39, %v1007_v42  ;;  %v1047_v17 = vmul.f32 %v2977_v22, %v2977_v22 }
 0x15d   : > { %2135 = vrsqrt.f32 %v2989_v32  ;;  %v1051_v0 = vmul.f32 %v2987_v56, %v2987_v56  ;;  %vm1147_vm2 = vweird.f32 %v2134_v54  ;;  %v1066_v39 = vmul.f32 %v2982_v7, %v2982_v7 }
 0x15e   : > { %v1142_v57 = vmul.f32 %v2134_v54, %v1141_v19  ;;  %v1076_v44 = vadd.f32 %v1075_v15, %v1054_v13  ;;  %v3005_v13 = vsub.f32 %v2871_v60, %v1007_v42  ;;  %v1081_v15 = vadd.f32 %v1047_v17, %v1043_v20  ;;  %vm1148_vm4 = vmor %vm1146_vm3, %vm1147_vm2 }
 0x15f   : > { %v1055_v52 = vmul.f32 %v2997_v59, %v2997_v59  ;;  %v1070_v60 = vmul.f32 %v2994_v9, %v2994_v9  ;;  %vm1136_vm6 = vweird.f32 %v2989_v32 }
 0x160   : > { %v1143_v49 = vmul.f32 0.5, %v1142_v57  ;;  %v1077_v19 = vadd.f32 %v1076_v44, %v1058_v62  ;;  %v3012_v57 = vsub.f32 %v2888_v36, %v1007_v42  ;;  %v1082_v44 = vadd.f32 %v1081_v15, %v1051_v0 }
 0x161   : > { %v1059_v20 = vmul.f32 %v3005_v13, %v3005_v13 }
 0x162   : > { %v1144_v41 = vsub.f32 1.5, %v1143_v49  ;;  %v1078_v5 = vadd.f32 %v1077_v19, %v1062_v24  ;;  %v3019_v49 = vsub.f32 %v2915_v34, %v1007_v42  ;;  %v1083_v17 = vadd.f32 %v1082_v44, %v1055_v52 }
 0x163   : > { %v2136_v24 = vpop.eup %2135 }
 0x164   : > { %v1145_v62 = vmul.f32 %v2134_v54, %v1144_v41  ;;  %v1079_v2 = vadd.f32 %v1078_v5, %v1066_v39  ;;  %v1131_v29 = vmul.f32 %v2136_v24, %v2989_v32  ;;  %v1063_v5 = vmul.f32 %v3012_v57, %v3012_v57 }
 0x165   : > { %v1084_v39 = vadd.f32 %v1083_v17, %v1059_v20  ;;  %vm1137_vm5 = vweird.f32 %v2136_v24 }
 0x166   : > { %v1149_v19 = vsel %vm1148_vm4, %v2134_v54, %v1145_v62  ;;  %v1080_v36 = vadd.f32 %v1079_v2, %v1070_v60  ;;  %v1132_v52 = vmul.f32 %v2136_v24, %v1131_v29  ;;  %v1067_v2 = vmul.f32 %v3019_v49, %v3019_v49  ;;  %vm1138_vm7 = vmor %vm1136_vm6, %vm1137_vm5 }
 0x167   : > { %v3026_v41 = vmul.f32 0.5, %v1149_v19  ;;  %v1085_v54 = vadd.f32 %v1084_v39, %v1063_v5  ;;  %v1071_v62 = vmul.f32 %v3024_v11, %v3024_v11  ;;  %v3051_v39 = vstv %s2016_s20  ;;  %s1983_s20 = sshll.u32 %s2491_s16, 3 }
 0x168   : > { %v1102_v0 = vmul.f32 0.14285715, %v1080_v36  ;;  %v1133_v44 = vmul.f32 0.5, %v1132_v52  ;;  %v3055_v52 = vstv %s969_s21  ;;  %vm1851_vm5 = vcmask 1041409   ;;  %s2036_s21 = sshll.u32 %s2433_s6, 3  ;;  %s398_s6 = scalar_lea.vmem [#allocation9], %s1983_s20 }
 0x169   : > { %v1185_v15 = vmul.f32 %v3026_v41, %v2876_v30  ;;  %v1157_v42 = vmul.f32 %v3026_v41, %v2805_v10  ;;  %v1086_v20 = vadd.f32 %v1085_v54, %v1067_v2  ;;  %v1161_v36 = vmul.f32 %v3026_v41, %v2808_v45  ;;  %s1878_s26 = scalar_lea.hbm %s3532_s8, %s2036_s21  ;;  %s1880_s22 = sshll.u32 %s398_s6, 4  ;;  %s1881_s22 = int_to_ptr.vmem [resolvable:$true] %s1880_s22 }
 0x16a   : > { %v3035_v60 = vadd.f32 1e-09, %v1102_v0  ;;  %v1165_v30 = vmul.f32 %v3026_v41, %v2811_v46  ;;  %v1134_v17 = vsub.f32 1.5, %v1133_v44  ;;  %v1169_v10 = vmul.f32 %v3026_v41, %v2820_v6  ;;  %s1882_s24 = sshll.u32 %s1878_s26, 4  ;;  %s1883_s24 = int_to_ptr.hbm [resolvable:$true] %s1882_s24 }
 0x16b   : > { %2137 = vtanh.f32 %v1185_v15  ;;  %v1087_v19 = vadd.f32 %v1086_v20, %v1071_v62  ;;  %v1181_v45 = vmul.f32 %v3026_v41, %v2864_v28  ;;  %vm1853_vm6 = vcmask 1042434   ;;  %s2300_s28 = sshra.s32 %s1883_s24, 4  ;;  %s2301_s28 = int_to_ptr.hbm [resolvable:$true] %s2300_s28 }
 0x16c   : > { %2139 = vrsqrt.f32 %v3035_v60  ;;  %v1135_v29 = vmul.f32 %v2136_v24, %v1134_v17  ;;  %vm1116_vm9 = vweird.f32 %v3035_v60  ;;  %s2302_s27 = scalar_lea.hbm %s2301_s28, 8  ;;  %p2307_p5 = scmp.lt.s32.totalorder %s2301_s28, %s3532_s8 }
 0x16d   : > { %2141 = vtanh.f32 %v1157_v42  ;;  %v1103_v5 = vmul.f32 0.14285715, %v1087_v19  ;;  %p2303_p2 = scmp.ne.s32.totalorder %s2301_s28, %s2302_s27 }
 0x16e   : > { %2143 = vtanh.f32 %v1161_v36  ;;  %v1139_v46 = vsel %vm1138_vm7, %v2136_v24, %v1135_v29  ;;  %vm1855_vm7 = vcmask 1043459  }
 0x16f   : > { %2145 = vtanh.f32 %v1165_v30  ;;  %v3053_v0 = vadd.f32 1e-09, %v1103_v5  ;;  %v3057_v6 = vmul.f32 0.5, %v1139_v46  ;;  %p2304_p3 = pnand %p2303_p2, %p2455_p6 }
 0x170   : > { %2147 = vtanh.f32 %v1169_v10 }
 0x171   : > { %v2138_v15 = vpop.eup %2137  ;;  %2149 = vrsqrt.f32 %v3053_v0  ;;  %v1156_v24 = vmul.f32 %v3057_v6, %v2881_v14  ;;  %v1160_v20 = vmul.f32 %v3057_v6, %v2884_v63  ;;  %v1164_v36 = vmul.f32 %v3057_v6, %v2895_v21  ;;  %p2305_p4 = pneg %p2304_p3 }
 0x172   : > { %v2140_v2 = vpop.eup %2139  ;;  %v1250_v32 = vmul.f32 %v2138_v15, %v3051_v39  ;;  %2151 = vtanh.f32 %v1181_v45  ;;  %v1168_v10 = vmul.f32 %v3057_v6, %v2904_v37  ;;  %v1173_v14 = vmul.f32 %v3026_v41, %v2837_v4 }
 0x173   : > { %v2142_v54 = vpop.eup %2141  ;;  %v1111_v28 = vmul.f32 %v2140_v2, %v3035_v60  ;;  %2153 = vtanh.f32 %v1156_v24  ;;  %v1184_v4 = vmul.f32 %v3057_v6, %v2938_v35  ;;  %vm1117_vm8 = vweird.f32 %v2140_v2 }
 0x174   : > { %v2144_v42 = vpop.eup %2143  ;;  %v1283_v44 = vadd.f32 %v3055_v52, %v1250_v32  ;;  %v1222_v62 = vmul.f32 %v2142_v54, %v3051_v39  ;;  %2155 = vtanh.f32 %v1160_v20  ;;  %vm1118_vm10 = vmor %vm1116_vm9, %vm1117_vm8  ;;  %vm1126_vm11 = vweird.f32 %v3053_v0 }
 0x175   : > { %v2146_v30 = vpop.eup %2145  ;;  %v1112_v17 = vmul.f32 %v2140_v2, %v1111_v28  ;;  %v1226_v19 = vmul.f32 %v2144_v42, %v3051_v39  ;;  %2157 = vtanh.f32 %v1164_v36  ;;  %vm1857_vm8 = vcmask 1044484  }
 0x176   : > { %v2148_v29 = vpop.eup %2147  ;;  %v3076_v5 = vmul.f32 %v1283_v44, %v2788_v51  ;;  %v1255_v45 = vadd.f32 %v3055_v52, %v1222_v62  ;;  %v1230_v63 = vmul.f32 %v2146_v30, %v3051_v39  ;;  %2159 = vtanh.f32 %v1168_v10 }
 0x177   : > { %v1113_v21 = vmul.f32 0.5, %v1112_v17  ;;  %v1259_v46 = vadd.f32 %v3055_v52, %v1226_v19  ;;  %v1234_v15 = vmul.f32 %v2148_v29, %v3051_v39  ;;  %v3082_v32 = vpop.eup %2149  ;;  %2161 = vtanh.f32 %v1173_v14 }
 0x178   : > { %v1287_v37 = vmul.f32 %v1255_v45, %v2745_v47  ;;  %v1263_v51 = vadd.f32 %v3055_v52, %v1230_v63  ;;  %v3088_v54 = vpop.eup %2151  ;;  %v1121_v24 = vmul.f32 %v3082_v32, %v3053_v0  ;;  %v1177_v47 = vmul.f32 %v3026_v41, %v2853_v40 }
 0x179   : > { %v1114_v28 = vsub.f32 1.5, %v1113_v21  ;;  %v1291_v42 = vmul.f32 %v1259_v46, %v2747_v48  ;;  %v1267_v62 = vadd.f32 %v3055_v52, %v1234_v15  ;;  %v2154_v36 = vpop.eup %2153  ;;  %2163 = vtanh.f32 %v1184_v4 }
 0x17a   : > { %1363 = vmatpush.msra.mxu0 %v1287_v37  ;;  %v1295_v44 = vmul.f32 %v1263_v51, %v2754_v55  ;;  %v1122_v20 = vmul.f32 %v3082_v32, %v1121_v24  ;;  %v1172_v55 = vmul.f32 %v3057_v6, %v2910_v53  ;;  %v2156_v40 = vpop.eup %2155  ;;  %vm1127_vm12 = vweird.f32 %v3082_v32 }
 0x17b   : > { %v1115_v35 = vmul.f32 %v2140_v2, %v1114_v28  ;;  %1392 = vmatpush.msra.mxu1 %v1291_v42  ;;  %v1299_v48 = vmul.f32 %v1267_v62, %v2760_v1  ;;  %v1221_v60 = vmul.f32 %v2154_v36, %v3051_v39  ;;  %v2158_v17 = vpop.eup %2157  ;;  %v1225_v10 = vmul.f32 %v2156_v40, %v3051_v39  ;;  %vm1128_vm13 = vmor %vm1126_vm11, %vm1127_vm12 }
 0x17c   : > { %1421 = vmatpush.msra.mxu2 %v1295_v44  ;;  %v1123_v30 = vmul.f32 0.5, %v1122_v20  ;;  %2165 = vtanh.f32 %v1177_v47  ;;  %v1176_v1 = vmul.f32 %v3057_v6, %v2920_v23  ;;  %v2160_v29 = vpop.eup %2159  ;;  %vm1859_vm9 = vcmask 1045509  }
 0x17d   : > { %v1119_v41 = vsel %vm1118_vm10, %v2140_v2, %v1115_v35  ;;  %1450 = vmatpush.msra.mxu3 %v1299_v48  ;;  %v1254_v53 = vadd.f32 %v3055_v52, %v1221_v60  ;;  %v1229_v2 = vmul.f32 %v2158_v17, %v3051_v39  ;;  %2167 = vtanh.f32 %v1172_v55  ;;  %v2162_v15 = vpop.eup %2161 }
 0x17e   : > { %v3106_v19 = vmul.f32 0.5, %v1119_v41  ;;  %v1124_v14 = vsub.f32 1.5, %v1123_v30  ;;  %v1258_v63 = vadd.f32 %v3055_v52, %v1225_v10  ;;  %v1233_v51 = vmul.f32 %v2160_v29, %v3051_v39 }
 0x17f   : > { %v1286_v4 = vmul.f32 %v1254_v53, %v2765_v8  ;;  %v1262_v37 = vadd.f32 %v3055_v52, %v1229_v2  ;;  %v2164_v28 = vpop.eup %2163  ;;  %2169 = vtanh.f32 %v1176_v1  ;;  %vm1861_vm10 = vcmask 1046534  }
 0x180   : > { %v1182_v45 = vmul.f32 %v3106_v19, %v2994_v9  ;;  %v1154_v21 = vmul.f32 %v3106_v19, %v2947_v27  ;;  %v1158_v46 = vmul.f32 %v3106_v19, %v2950_v12  ;;  %v1125_v23 = vmul.f32 %v3082_v32, %v1124_v14 }
 0x181   : > { %v1290_v9 = vmul.f32 %v1258_v63, %v2768_v61  ;;  %v1162_v27 = vmul.f32 %v3106_v19, %v2953_v58  ;;  %v1166_v12 = vmul.f32 %v3106_v19, %v2959_v33  ;;  %1364 = vmatpush.msra.mxu0 %v1286_v4  ;;  %v1294_v24 = vmul.f32 %v1262_v37, %v2774_v25 }
 0x182   : > { %v1129_v8 = vsel %vm1128_vm13, %v3082_v32, %v1125_v23  ;;  %v1266_v42 = vadd.f32 %v3055_v52, %v1233_v51  ;;  %2171 = vtanh.f32 %v1154_v21  ;;  %v2166_v44 = vpop.eup %2165  ;;  %v1238_v61 = vmul.f32 %v2162_v15, %v3051_v39 }
 0x183   : > { %2173 = vtanh.f32 %v1182_v45  ;;  %v1151_v0 = vmul.f32 0.5, %v1129_v8  ;;  %1393 = vmatpush.msra.mxu1 %v1290_v9  ;;  %v1246_v58 = vmul.f32 %v3088_v54, %v3051_v39  ;;  %v2168_v62 = vpop.eup %2167  ;;  %1422 = vmatpush.msra.mxu2 %v1294_v24  ;;  %v1249_v10 = vmul.f32 %v2164_v28, %v3051_v39  ;;  %v3579_v24 = vld [vmem:[#allocation13_spill] sm:$0xff] }
 0x184   : > { %v1298_v33 = vmul.f32 %v1266_v42, %v2781_v18  ;;  %2175 = vtanh.f32 %v1158_v46  ;;  %v1271_v36 = vadd.f32 %v3055_v52, %v1238_v61  ;;  %v1237_v40 = vmul.f32 %v2168_v62, %v3051_v39 }
 0x185   : > { %v1183_v32 = vmul.f32 %v1151_v0, %v3024_v11  ;;  %v1155_v25 = vmul.f32 %v1151_v0, %v2974_v43  ;;  %v1159_v47 = vmul.f32 %v1151_v0, %v2977_v22  ;;  %2177 = vtanh.f32 %v1162_v27  ;;  %v2170_v20 = vpop.eup %2169  ;;  %v3578_v27 = vld [vmem:[#allocation15_spill] sm:$0xff] }
 0x186   : > { %1451 = vmatpush.msra.mxu3 %v1298_v33  ;;  %v1163_v35 = vmul.f32 %v1151_v0, %v2987_v56  ;;  %2179 = vtanh.f32 %v1166_v12  ;;  %v1167_v54 = vmul.f32 %v1151_v0, %v2997_v59  ;;  %v1279_v18 = vadd.f32 %v3055_v52, %v1246_v58  ;;  %v1332_v58 = vld [vmem:[%s3528_s4] sm:$0xff]  ;;  %v3580_v33 = vld [vmem:[#allocation22_spill] sm:$0xff] }
 0x187   : > { %2181 = vtanh.f32 %v1183_v32  ;;  %v1180_v11 = vmul.f32 %v3057_v6, %v2928_v38  ;;  %v1242_v22 = vmul.f32 %v2166_v44, %v3051_v39  ;;  %v1171_v56 = vmul.f32 %v1151_v0, %v3005_v13 }
 0x188   : > { %v2172_v48 = vpop.eup %2171  ;;  %2183 = vtanh.f32 %v1155_v25  ;;  %v1175_v41 = vmul.f32 %v1151_v0, %v3012_v57  ;;  %v3157_v60 = vmul.f32 %v1271_v36, %v2762_v3  ;;  %v3160_v38 = vmul.f32 %v1279_v18, %v2777_v26  ;;  %v3582_v36 = vld [vmem:[#allocation14_spill] sm:$0xff] }
 0x189   : > { %v3149_v43 = vpop.eup %2173  ;;  %2185 = vtanh.f32 %v1159_v47  ;;  %v1219_v59 = vmul.f32 %v2172_v48, %v3051_v39  ;;  %v1179_v6 = vmul.f32 %v1151_v0, %v3019_v49  ;;  %v1241_v13 = vmul.f32 %v2170_v20, %v3051_v39  ;;  %v3581_v20 = vld [vmem:[#allocation23_spill] sm:$0xff] }
 0x18a   : > { %v2176_v55 = vpop.eup %2175  ;;  %2187 = vtanh.f32 %v1163_v35  ;;  %v1170_v1 = vmul.f32 %v3106_v19, %v2966_v50  ;;  %v3169_v3 = vadd.f32 %v3055_v52, %v1242_v22  ;;  %v1174_v26 = vmul.f32 %v3106_v19, %v2971_v16 }
 0x18b   : > { %v2178_v30 = vpop.eup %2177  ;;  %2189 = vtanh.f32 %v1167_v54  ;;  %v1223_v14 = vmul.f32 %v2176_v55, %v3051_v39  ;;  %v1252_v53 = vadd.f32 %v3055_v52, %v1219_v59  ;;  %v3175_v2 = vadd.f32 %v3055_v52, %v1237_v40 }
 0x18c   : > { %v2180_v17 = vpop.eup %2179  ;;  %2191 = vtanh.f32 %v1180_v11  ;;  %v1178_v50 = vmul.f32 %v3106_v19, %v2982_v7  ;;  %v1227_v63 = vmul.f32 %v2178_v30, %v3051_v39  ;;  %v3184_v15 = vadd.f32 %v3055_v52, %v1241_v13  ;;  %v3584_v30 = vld [vmem:[#allocation20_spill] sm:$0xff] }
 0x18d   : > { %v2182_v57 = vpop.eup %2181  ;;  %2193 = vtanh.f32 %v1171_v56  ;;  %v1231_v21 = vmul.f32 %v2180_v17, %v3051_v39  ;;  %v3187_v23 = vadd.f32 %v3055_v52, %v1249_v10  ;;  %v1256_v37 = vadd.f32 %v3055_v52, %v1223_v14  ;;  %v3583_v56 = vld [vmem:[#allocation26_spill] sm:$0xff]  ;;  %v3585_v17 = vld [vmem:[#allocation24_spill] sm:$0xff]  ;;  %v1320_v10 = vld [vmem:[#allocation4 + $0x20] sm:$0xff] }
 0x18e   : > { %v2184_v49 = vpop.eup %2183  ;;  %2195 = vtanh.f32 %v1175_v41  ;;  %v1284_v12 = vmul.f32 %v1252_v53, %v3578_v27  ;;  %v1260_v0 = vadd.f32 %v3055_v52, %v1227_v63  ;;  %v1248_v48 = vmul.f32 %v2182_v57, %v3051_v39  ;;  %v3586_v53 = vld [vmem:[#allocation16_spill] sm:$0xff] }
 0x18f   : > { %v2186_v29 = vpop.eup %2185  ;;  %v1220_v45 = vmul.f32 %v2184_v49, %v3051_v39  ;;  %2197 = vtanh.f32 %v1179_v6  ;;  %v1264_v61 = vadd.f32 %v3055_v52, %v1231_v21  ;;  %v1288_v18 = vmul.f32 %v1256_v37, %v3582_v36  ;;  %v1322_v21 = vld [vmem:[#allocation4 + $0x30] sm:$0xff]  ;;  %v1328_v36 = vld [vmem:[#allocation4 + $0x60] sm:$0xff] }
 0x190   : > { %v2188_v46 = vpop.eup %2187  ;;  %v1224_v16 = vmul.f32 %v2186_v29, %v3051_v39  ;;  %2199 = vtanh.f32 %v1170_v1  ;;  %v2363_v11 = vmov 0   ;;  %v1292_v6 = vmul.f32 %v1260_v0, %v3584_v30  ;;  %v1316_v29 = vld [vmem:[#allocation4] sm:$0xff]  ;;  %v1318_v37 = vld [vmem:[#allocation4 + $0x10] sm:$0xff] }
 0x191   : > { %v2190_v4 = vpop.eup %2189  ;;  %v1253_v7 = vadd.f32 %v3055_v52, %v1220_v45  ;;  %v1228_v19 = vmul.f32 %v2188_v46, %v3051_v39  ;;  %2201 = vtanh.f32 %v1174_v26  ;;  %2128 = vset.pattern.permute.xlu1 %v2363_v11  ;;  %v1296_v13 = vmul.f32 %v1264_v61, %v3585_v17  ;;  %v3587_v46 = vld [vmem:[#allocation17_spill] sm:$0xff]  ;;  %v3594_v61 = vld [vmem:[#allocation28_spill] sm:$0xff]  ;;  %2129 = vset.pattern.permute.xlu2 %v2363_v11 }
 0x192   : > { %v2192_v51 = vpop.eup %2191  ;;  %v1257_v28 = vadd.f32 %v3055_v52, %v1224_v16  ;;  %v1232_v9 = vmul.f32 %v2190_v4, %v3051_v39  ;;  %2203 = vtanh.f32 %v1178_v50  ;;  %1336 = vperm.xlu1 %2128, %v1332_v58   ;;  %v1307_v50 = vmul.f32 %v3169_v3, %v3586_v53  ;;  %v3588_v3 = vld [vmem:[#allocation18_spill] sm:$0xff]  ;;  %2130 = vset.pattern.permute.xlu0 %v2363_v11 }
 0x193   : > { %v2194_v8 = vpop.eup %2193  ;;  %v1285_v42 = vmul.f32 %v1253_v7, %v3579_v24  ;;  %v1261_v44 = vadd.f32 %v3055_v52, %v1228_v19  ;;  %v1245_v47 = vmul.f32 %v2192_v51, %v3051_v39  ;;  %v1247_v63 = vmul.f32 %v3149_v43, %v3051_v39  ;;  %v3589_v43 = vld [vmem:[#allocation21_spill] sm:$0xff]  ;;  %v1327_v11 = vld [vmem:[#allocation4 + $0x58] sm:$0xff] }
 0x194   : > { %v2196_v62 = vpop.eup %2195  ;;  %v1289_v32 = vmul.f32 %v1257_v28, %v3580_v33  ;;  %v1265_v25 = vadd.f32 %v3055_v52, %v1232_v9  ;;  %v1236_v59 = vmul.f32 %v2194_v8, %v3051_v39  ;;  %v1302_v16 = vmul.f32 %v3175_v2, %v3587_v46  ;;  %v3592_v8 = vld [vmem:[#allocation30_spill] sm:$0xff]  ;;  %v3596_v33 = vld [vmem:[#allocation32_spill] sm:$0xff] }
 0x195   : > { %v2198_v35 = vpop.eup %2197  ;;  %1365 = vmatpush.msra.mxu0 %v1285_v42  ;;  %v1293_v54 = vmul.f32 %v1261_v44, %v3581_v20  ;;  %v1240_v40 = vmul.f32 %v2196_v62, %v3051_v39  ;;  %v1278_v14 = vadd.f32 %v3055_v52, %v1245_v47  ;;  %v1306_v7 = vmul.f32 %v3184_v15, %v3588_v3  ;;  %v1317_v47 = vld [vmem:[#allocation4 + $0x8] sm:$0xff] }
 0x196   : > { %v2200_v22 = vpop.eup %2199  ;;  %1394 = vmatpush.msra.mxu1 %v1289_v32  ;;  %v1297_v55 = vmul.f32 %v1265_v25, %v3583_v56  ;;  %v1244_v1 = vmul.f32 %v2198_v35, %v3051_v39  ;;  %v1269_v4 = vadd.f32 %v3055_v52, %v1236_v59  ;;  %v1280_v27 = vadd.f32 %v3055_v52, %v1247_v63  ;;  %v1321_v25 = vld [vmem:[#allocation4 + $0x28] sm:$0xff]  ;;  %v1323_v35 = vld [vmem:[#allocation4 + $0x38] sm:$0xff] }
 0x197   : > { %v2202_v41 = vpop.eup %2201  ;;  %1423 = vmatpush.msra.mxu2 %v1293_v54  ;;  %1366 = vmatpush.msra.mxu0 %v1284_v12  ;;  %v1235_v26 = vmul.f32 %v2200_v22, %v3051_v39  ;;  %v1310_v2 = vmul.f32 %v1278_v14, %v3589_v43  ;;  %v1333_v20 = vld [vmem:[%s3528_s4 + $0x8] sm:$0xff]  ;;  %v1749_v54 = vld [vmem:[%s3529_s5] sm:$0xff]  ;;  %v1326_v22 = vld [vmem:[#allocation4 + $0x50] sm:$0xff]  ;;  %vm1863_vm11 = vcmask 1047559  }
 0x198   : > { %v2204_v57 = vpop.eup %2203  ;;  %1452 = vmatpush.msra.mxu3 %v1297_v55  ;;  %1395 = vmatpush.msra.mxu1 %v1288_v18  ;;  %v1239_v49 = vmul.f32 %v2202_v41, %v3051_v39  ;;  %v1277_v19 = vadd.f32 %v3055_v52, %v1244_v1  ;;  %v1312_v32 = vmul.f32 %v1280_v27, %v3596_v33  ;;  %v1324_v18 = vld [vmem:[#allocation4 + $0x40] sm:$0xff]  ;;  %v1329_v56 = vld [vmem:[#allocation4 + $0x68] sm:$0xff]  ;;  %v1331_v59 = vld [vmem:[#allocation4 + $0x78] sm:$0xff] }
 0x199   : > { %1424 = vmatpush.msra.mxu2 %v1292_v6  ;;  %1479 = vmatpush.msrb.mxu0 %v3157_v60  ;;  %v1243_v45 = vmul.f32 %v2204_v57, %v3051_v39  ;;  %v1273_v60 = vadd.f32 %v3055_v52, %v1240_v40  ;;  %v1281_v39 = vadd.f32 %v3055_v52, %v1248_v48  ;;  %v1330_v48 = vld [vmem:[#allocation4 + $0x70] sm:$0xff]  ;;  %v1325_v55 = vld [vmem:[#allocation4 + $0x48] sm:$0xff] }
 0x19a   : > { %1453 = vmatpush.msra.mxu3 %v1296_v13  ;;  %2021 = vmatmul.msk.f32.vlgmr.msra.gmra.mxu2 %vm1344_vm14, %v1320_v10  ;;  %v1268_v51 = vadd.f32 %v3055_v52, %v1235_v26  ;;  %v1272_v28 = vadd.f32 %v3055_v52, %v1239_v49  ;;  %v1309_v42 = vmul.f32 %v1277_v19, %v2915_v34  ;;  %v1750_v34 = vld [vmem:[%s3529_s5 + $0x8] sm:$0xff] }
 0x19b   : > { %1508 = vmatpush.msrb.mxu1 %v1307_v50  ;;  %1537 = vmatpush.msrb.mxu2 %v3160_v38  ;;  %v3590_v38 = vld [vmem:[#allocation25_spill] sm:$0xff]  ;;  %v1276_v9 = vadd.f32 %v3055_v52, %v1243_v45  ;;  %v1305_v24 = vmul.f32 %v1273_v60, %v3592_v8  ;;  %v1313_v44 = vmul.f32 %v1281_v39, %v2932_v31  ;;  %v3595_v52 = vld [vmem:[#allocation31_spill] sm:$0xff]  ;;  %v1319_v31 = vld [vmem:[#allocation4 + $0x18] sm:$0xff] }
 0x19c   : > { %1566 = vmatpush.msrb.mxu3 %v3076_v5  ;;  %2017 = vmatmul.msk.f32.vlgmr.msra.gmra.mxu0 %vm1344_vm14, %v1316_v29  ;;  %v1314_v15 = vmul.f32 %v3187_v23, %v3590_v38  ;;  %v3591_v5 = vld [vmem:[#allocation29_spill] sm:$0xff]  ;;  %v3593_v23 = vld [vmem:[#allocation27_spill] sm:$0xff]  ;;  %v1304_v58 = vmul.f32 %v1272_v28, %v3594_v61 }
 0x19d   : > { %2023 = vmatmul.msk.f32.vlgmr.msra.gmra.mxu3 %vm1344_vm14, %v1322_v21  ;;  %1480 = vmatpush.msrb.mxu0 %v1302_v16  ;;  %v1301_v12 = vmul.f32 %v1269_v4, %v3591_v5  ;;  %v1300_v0 = vmul.f32 %v1268_v51, %v3593_v23  ;;  %v1308_v62 = vmul.f32 %v1276_v9, %v3595_v52 }
 0x19e   : > { %1509 = vmatpush.msrb.mxu1 %v1306_v7  ;;  %1538 = vmatpush.msrb.mxu2 %v1310_v2 }
 0x19f   : > { %1567 = vmatpush.msrb.mxu3 %v1314_v15  ;;  %2019 = vmatmul.msk.f32.vlgmr.msra.gmra.mxu1 %vm1344_vm14, %v1318_v37 }
 0x1a0   : > { %1481 = vmatpush.msrb.mxu0 %v1301_v12  ;;  %1510 = vmatpush.msrb.mxu1 %v1305_v24  ;;  %v3597_v24 = vld [vmem:[#allocation19_spill] sm:$0xff] }
 0x1a1   : > { %1539 = vmatpush.msrb.mxu2 %v1309_v42  ;;  %1568 = vmatpush.msrb.mxu3 %v1313_v44 }
 0x1a2   : > { %1482 = vmatpush.msrb.mxu0 %v1300_v0  ;;  %1511 = vmatpush.msrb.mxu1 %v1304_v58 }
 0x1a3   : > { %1540 = vmatpush.msrb.mxu2 %v1308_v62  ;;  %1569 = vmatpush.msrb.mxu3 %v1312_v32 }
 0x1a4   : > { %2022 = vmatmul.msk.f32.gmra.mxu2 %vm1344_vm14, %v1321_v25  ;;  %2018 = vmatmul.msk.f32.gmra.mxu0 %vm1344_vm14, %v1317_v47 }
 0x1a5   : > { %2024 = vmatmul.msk.f32.gmra.mxu3 %vm1344_vm14, %v1323_v35  ;;  %1758 = vperm.xlu1 %2128, %v1750_v34  }
 0x1a6   : > { %1341 = vperm.xlu2 %2129, %v1333_v20   ;;  %1753 = vperm.xlu0 %2130, %v1749_v54  }
 0x1a7   : > { %2020 = vmatmul.msk.f32.gmra.mxu1 %vm1344_vm14, %v1319_v31 }
 0x1ac   : > { %2029 = vmatmul.msk.f32.vlgmr.msrb.gmra.mxu2 %vm1344_vm14, %v1328_v36  ;;  %2025 = vmatmul.msk.f32.vlgmr.msrb.gmra.mxu0 %vm1344_vm14, %v1324_v18 }
 0x1ad   : > { %2031 = vmatmul.msk.f32.vlgmr.msrb.gmra.mxu3 %vm1344_vm14, %v1330_v48 }
 0x1af   : > { %2027 = vmatmul.msk.f32.vlgmr.msrb.gmra.mxu1 %vm1344_vm14, %v1326_v22 }
 0x1b4   : > { %2030 = vmatmul.msk.f32.gmra.mxu2 %vm1344_vm14, %v1329_v56  ;;  %2026 = vmatmul.msk.f32.gmra.mxu0 %vm1344_vm14, %v1325_v55 }
 0x1b5   : > { %2032 = vmatmul.msk.f32.gmra.mxu3 %vm1344_vm14, %v1331_v59 }
 0x1b7   : > { %2028 = vmatmul.msk.f32.gmra.mxu1 %vm1344_vm14, %v1327_v11 }
 0x200   : > { %v1342_v45 = vpop.permute.xlu2 %1341 }
 0x204   : > { %v1337_v6 = vpop.permute.xlu1 %1336 }
 0x219   : > { %v1368_v40 = vpop.f32.mrf.mxu0 }
 0x21a   : > { %v3276_v13 = vadd.f32 %v1368_v40, %v1337_v6 }
 0x21c   : > { %v1397_v41 = vpop.f32.mrf.mxu1 }
 0x21d   : > { %v1426_v30 = vpop.f32.mrf.mxu2  ;;  %v3278_v10 = vadd.f32 %v1397_v41, %v1337_v6 }
 0x21e   : > { %v3280_v57 = vadd.f32 %v1426_v30, %v1337_v6 }
 0x21f   : > { %v1579_v26 = vadd.f32 %v3278_v10, %v3276_v13 }
 0x220   : > { %v1455_v17 = vpop.f32.mrf.mxu3 }
 0x221   : > { %v1371_v1 = vpop.f32.mrf.mxu0  ;;  %v3284_v49 = vadd.f32 %v1455_v17, %v1337_v6  ;;  %v1580_v53 = vadd.f32 %v1579_v26, %v3280_v57 }
 0x222   : > { %v3290_v16 = vadd.f32 %v1371_v1, %v1342_v45 }
 0x223   : > { %v1581_v46 = vadd.f32 %v1580_v53, %v3284_v49 }
 0x224   : > { %v1400_v14 = vpop.f32.mrf.mxu1 }
 0x225   : > { %v3292_v4 = vadd.f32 %v1400_v14, %v1342_v45 }
 0x227   : > { %v1429_v50 = vpop.f32.mrf.mxu2  ;;  %v1586_v43 = vadd.f32 %v3292_v4, %v3290_v16 }
 0x228   : > { %v1458_v29 = vpop.f32.mrf.mxu3  ;;  %v3297_v19 = vadd.f32 %v1429_v50, %v1342_v45 }
 0x229   : > { %v1484_v63 = vpop.f32.mrf.mxu0  ;;  %v3304_v28 = vadd.f32 %v1458_v29, %v1342_v45 }
 0x22a   : > { %v3287_v21 = vadd.f32 %v1484_v63, %v1337_v6  ;;  %v1587_v15 = vadd.f32 %v1586_v43, %v3297_v19 }
 0x22c   : > { %v1582_v60 = vadd.f32 %v1581_v46, %v3287_v21  ;;  %v1513_v3 = vpop.f32.mrf.mxu1  ;;  %v1588_v8 = vadd.f32 %v1587_v15, %v3304_v28 }
 0x22d   : > { %v3295_v7 = vadd.f32 %v1513_v3, %v1337_v6 }
 0x22f   : > { %v1542_v39 = vpop.f32.mrf.mxu2  ;;  %v1583_v2 = vadd.f32 %v1582_v60, %v3295_v7 }
 0x230   : > { %v3302_v37 = vadd.f32 %v1542_v39, %v1337_v6  ;;  %v1571_v51 = vpop.f32.mrf.mxu3 }
 0x231   : > { %v1487_v38 = vpop.f32.mrf.mxu0  ;;  %v3308_v27 = vadd.f32 %v1571_v51, %v1337_v6 }
 0x232   : > { %v1584_v9 = vadd.f32 %v1583_v2, %v3302_v37  ;;  %v3310_v5 = vadd.f32 %v1487_v38, %v1342_v45 }
 0x234   : > { %v1585_v12 = vadd.f32 %v1584_v9, %v3308_v27  ;;  %v1516_v44 = vpop.f32.mrf.mxu1  ;;  %v1589_v23 = vadd.f32 %v1588_v8, %v3310_v5 }
 0x235   : > { %v3325_v52 = vadd.f32 %v1516_v44, %v1342_v45 }
 0x236   : > { %v1593_v42 = vmul.f32 %v1585_v12, %v3597_v24 }
 0x237   : > { %v1545_v62 = vpop.f32.mrf.mxu2  ;;  %v1590_v47 = vadd.f32 %v1589_v23, %v3325_v52 }
 0x238   : > { %v3317_v0 = vsub.f32 %v3276_v13, %v1593_v42  ;;  %v3320_v61 = vsub.f32 %v3278_v10, %v1593_v42  ;;  %v3323_v58 = vsub.f32 %v3280_v57, %v1593_v42  ;;  %v3328_v33 = vsub.f32 %v3284_v49, %v1593_v42  ;;  %v1574_v35 = vpop.f32.mrf.mxu3 }
 0x239   : > { %v3336_v34 = vsub.f32 %v3287_v21, %v1593_v42  ;;  %v3340_v54 = vadd.f32 %v1545_v62, %v1342_v45  ;;  %v3343_v36 = vsub.f32 %v3295_v7, %v1593_v42  ;;  %v3348_v56 = vadd.f32 %v1574_v35, %v1342_v45 }
 0x23a   : > { %v1611_v32 = vmul.f32 %v3317_v0, %v3317_v0  ;;  %v1613_v25 = vmul.f32 %v3320_v61, %v3320_v61  ;;  %v1615_v31 = vmul.f32 %v3323_v58, %v3323_v58  ;;  %v1617_v18 = vmul.f32 %v3328_v33, %v3328_v33 }
 0x23b   : > { %v1591_v22 = vadd.f32 %v1590_v47, %v3340_v54  ;;  %v3351_v55 = vsub.f32 %v3302_v37, %v1593_v42  ;;  %v1619_v59 = vmul.f32 %v3336_v34, %v3336_v34  ;;  %v3357_v41 = vsub.f32 %v3308_v27, %v1593_v42 }
 0x23c   : > { %v1627_v20 = vadd.f32 %v1613_v25, %v1611_v32  ;;  %v1621_v30 = vmul.f32 %v3343_v36, %v3343_v36 }
 0x23d   : > { %v1592_v40 = vadd.f32 %v1591_v22, %v3348_v56  ;;  %v1623_v1 = vmul.f32 %v3351_v55, %v3351_v55  ;;  %v1625_v29 = vmul.f32 %v3357_v41, %v3357_v41 }
 0x23e   : > { %v1628_v48 = vadd.f32 %v1627_v20, %v1615_v31 }
 0x23f   : > { %v1594_v17 = vmul.f32 %v1592_v40, %v3597_v24 }
 0x240   : > { %v1629_v11 = vadd.f32 %v1628_v48, %v1617_v18 }
 0x241   : > { %v3365_v26 = vsub.f32 %v3290_v16, %v1594_v17  ;;  %v3368_v53 = vsub.f32 %v3292_v4, %v1594_v17  ;;  %v3371_v50 = vsub.f32 %v3297_v19, %v1594_v17  ;;  %v3376_v63 = vsub.f32 %v3304_v28, %v1594_v17 }
 0x242   : > { %v1630_v6 = vadd.f32 %v1629_v11, %v1619_v59  ;;  %v3383_v39 = vsub.f32 %v3310_v5, %v1594_v17  ;;  %v3388_v38 = vsub.f32 %v3325_v52, %v1594_v17  ;;  %v3393_v8 = vsub.f32 %v3340_v54, %v1594_v17 }
 0x243   : > { %v1612_v46 = vmul.f32 %v3365_v26, %v3365_v26  ;;  %v1614_v60 = vmul.f32 %v3368_v53, %v3368_v53  ;;  %v1616_v43 = vmul.f32 %v3371_v50, %v3371_v50  ;;  %v1618_v15 = vmul.f32 %v3376_v63, %v3376_v63 }
 0x244   : > { %v1631_v14 = vadd.f32 %v1630_v6, %v1621_v30  ;;  %v1620_v24 = vmul.f32 %v3383_v39, %v3383_v39  ;;  %v3398_v44 = vsub.f32 %v3348_v56, %v1594_v17  ;;  %v1622_v23 = vmul.f32 %v3388_v38, %v3388_v38 }
 0x245   : > { %v1634_v2 = vadd.f32 %v1614_v60, %v1612_v46  ;;  %v1624_v32 = vmul.f32 %v3393_v8, %v3393_v8 }
 0x246   : > { %v1632_v45 = vadd.f32 %v1631_v14, %v1623_v1  ;;  %v1626_v47 = vmul.f32 %v3398_v44, %v3398_v44 }
 0x247   : > { %v1635_v9 = vadd.f32 %v1634_v2, %v1616_v43 }
 0x248   : > { %v1633_v3 = vadd.f32 %v1632_v45, %v1625_v29 }
 0x249   : > { %v1636_v42 = vadd.f32 %v1635_v9, %v1618_v15 }
 0x24a   : > { %v1641_v51 = vmul.f32 0.14285715, %v1633_v3 }
 0x24b   : > { %v1637_v62 = vadd.f32 %v1636_v42, %v1620_v24 }
 0x24c   : > { %v1643_v12 = vadd.f32 1e-09, %v1641_v51 }
 0x24d   : > { %v1638_v25 = vadd.f32 %v1637_v62, %v1622_v23 }
 0x24e   : > { %2205 = vrsqrt.f32 %v1643_v12  ;;  %vm1651_vm0 = vweird.f32 %v1643_v12 }
 0x24f   : > { %v1639_v35 = vadd.f32 %v1638_v25, %v1624_v32 }
 0x251   : > { %v1640_v20 = vadd.f32 %v1639_v35, %v1626_v47 }
 0x253   : > { %v1642_v48 = vmul.f32 0.14285715, %v1640_v20 }
 0x254   : > { %v2206_v31 = vpop.eup %2205 }
 0x255   : > { %v1646_v18 = vmul.f32 %v2206_v31, %v1643_v12  ;;  %v1644_v59 = vadd.f32 1e-09, %v1642_v48  ;;  %vm1652_vm15 = vweird.f32 %v2206_v31 }
 0x256   : > { %vm1653_vm1 = vmor %vm1651_vm0, %vm1652_vm15 }
 0x257   : > { %v1647_v22 = vmul.f32 %v2206_v31, %v1646_v18  ;;  %2207 = vrsqrt.f32 %v1644_v59  ;;  %vm1661_vm3 = vweird.f32 %v1644_v59 }
 0x259   : > { %v1648_v11 = vmul.f32 0.5, %v1647_v22 }
 0x25b   : > { %v1649_v40 = vsub.f32 1.5, %v1648_v11 }
 0x25d   : > { %v1650_v30 = vmul.f32 %v2206_v31, %v1649_v40  ;;  %v2208_v17 = vpop.eup %2207 }
 0x25e   : > { %v1656_v14 = vmul.f32 %v2208_v17, %v1644_v59  ;;  %vm1662_vm2 = vweird.f32 %v2208_v17 }
 0x25f   : > { %v1654_v6 = vsel %vm1653_vm1, %v2206_v31, %v1650_v30  ;;  %vm1663_vm4 = vmor %vm1661_vm3, %vm1662_vm2 }
 0x260   : > { %v1665_v1 = vmul.f32 0.5, %v1654_v6  ;;  %v1657_v43 = vmul.f32 %v2208_v17, %v1656_v14 }
 0x262   : > { %v1667_v29 = vmul.f32 %v1665_v1, %v3317_v0  ;;  %v1669_v45 = vmul.f32 %v1665_v1, %v3320_v61  ;;  %v1671_v46 = vmul.f32 %v1665_v1, %v3323_v58  ;;  %v1673_v60 = vmul.f32 %v1665_v1, %v3328_v33 }
 0x263   : > { %v1675_v3 = vmul.f32 %v1665_v1, %v3336_v34  ;;  %v1677_v2 = vmul.f32 %v1665_v1, %v3343_v36  ;;  %v1679_v51 = vmul.f32 %v1665_v1, %v3351_v55  ;;  %v1658_v15 = vmul.f32 0.5, %v1657_v43 }
 0x264   : > { %2209 = vtanh.f32 %v1667_v29  ;;  %v1681_v0 = vmul.f32 %v1665_v1, %v3357_v41  ;;  %v3414_v61 = vstv %s2034_s11  ;;  %v3416_v36 = vstv %s2033_s13 }
 0x265   : > { %2211 = vtanh.f32 %v1669_v45  ;;  %v1659_v58 = vsub.f32 1.5, %v1658_v15 }
 0x266   : > { %2213 = vtanh.f32 %v1671_v46 }
 0x267   : > { %2215 = vtanh.f32 %v1673_v60  ;;  %v1660_v34 = vmul.f32 %v2208_v17, %v1659_v58 }
 0x268   : > { %2217 = vtanh.f32 %v1675_v3  ;;  %v1754_v3 = vpop.permute.xlu0 %1753 }
 0x269   : > { %2219 = vtanh.f32 %v1677_v2  ;;  %v1664_v41 = vsel %vm1663_vm4, %v2208_v17, %v1660_v34 }
 0x26a   : > { %v2210_v33 = vpop.eup %2209  ;;  %2221 = vtanh.f32 %v1679_v51  ;;  %v1666_v23 = vmul.f32 0.5, %v1664_v41 }
 0x26b   : > { %v2212_v9 = vpop.eup %2211  ;;  %2223 = vtanh.f32 %v1681_v0  ;;  %v1700_v55 = vmul.f32 %v2210_v33, %v3414_v61 }
 0x26c   : > { %v2214_v12 = vpop.eup %2213  ;;  %v1702_v24 = vmul.f32 %v2212_v9, %v3414_v61  ;;  %v1668_v31 = vmul.f32 %v1666_v23, %v3365_v26  ;;  %v1670_v20 = vmul.f32 %v1666_v23, %v3368_v53  ;;  %v1672_v18 = vmul.f32 %v1666_v23, %v3371_v50 }
 0x26d   : > { %v2216_v42 = vpop.eup %2215  ;;  %v1704_v32 = vmul.f32 %v2214_v12, %v3414_v61  ;;  %v1717_v47 = vadd.f32 %v3416_v36, %v1700_v55  ;;  %v1674_v59 = vmul.f32 %v1666_v23, %v3376_v63  ;;  %v1676_v11 = vmul.f32 %v1666_v23, %v3383_v39 }
 0x26e   : > { %v2218_v62 = vpop.eup %2217  ;;  %v1706_v25 = vmul.f32 %v2216_v42, %v3414_v61  ;;  %v1719_v48 = vadd.f32 %v3416_v36, %v1702_v24  ;;  %v1678_v40 = vmul.f32 %v1666_v23, %v3388_v38  ;;  %v1680_v30 = vmul.f32 %v1666_v23, %v3393_v8 }
 0x26f   : > { %v2220_v35 = vpop.eup %2219  ;;  %2225 = vtanh.f32 %v1668_v31  ;;  %v1708_v17 = vmul.f32 %v2218_v62, %v3414_v61  ;;  %v1721_v1 = vadd.f32 %v3416_v36, %v1704_v32  ;;  %v1682_v29 = vmul.f32 %v1666_v23, %v3398_v44  ;;  %v1759_v31 = vpop.permute.xlu1 %1758 }
 0x270   : > { %v2222_v22 = vpop.eup %2221  ;;  %v1710_v26 = vmul.f32 %v2220_v35, %v3414_v61  ;;  %2227 = vtanh.f32 %v1670_v20  ;;  %v1723_v63 = vadd.f32 %v3416_v36, %v1706_v25  ;;  %v1733_v45 = vmul.f32 %v1717_v47, %v3276_v13 }
 0x271   : > { %v2224_v6 = vpop.eup %2223  ;;  %v1712_v53 = vmul.f32 %v2222_v22, %v3414_v61  ;;  %2229 = vtanh.f32 %v1672_v18  ;;  %v1725_v39 = vadd.f32 %v3416_v36, %v1708_v17  ;;  %v1735_v46 = vmul.f32 %v1719_v48, %v3278_v10 }
 0x272   : > { %v1714_v50 = vmul.f32 %v2224_v6, %v3414_v61  ;;  %v1727_v38 = vadd.f32 %v3416_v36, %v1710_v26  ;;  %2231 = vtanh.f32 %v1674_v59  ;;  %v1737_v60 = vmul.f32 %v1721_v1, %v3280_v57 }
 0x273   : > { %v1729_v8 = vadd.f32 %v3416_v36, %v1712_v53  ;;  %2233 = vtanh.f32 %v1676_v11  ;;  %v1739_v43 = vmul.f32 %v1723_v63, %v3284_v49  ;;  %v1741_v2 = vmul.f32 %v1725_v39, %v3287_v21 }
 0x274   : > { %v1731_v14 = vadd.f32 %v3416_v36, %v1714_v50  ;;  %2235 = vtanh.f32 %v1678_v40  ;;  %v1743_v44 = vmul.f32 %v1727_v38, %v3295_v7  ;;  %v1761_v33 = vmul.f32 %v1754_v3, %v1733_v45 }
 0x275   : > { %v2226_v51 = vpop.eup %2225  ;;  %2237 = vtanh.f32 %v1680_v30  ;;  %v1745_v15 = vmul.f32 %v1729_v8, %v3302_v37  ;;  %v1763_v34 = vmul.f32 %v1754_v3, %v1735_v46  ;;  %v1765_v49 = vmul.f32 %v1754_v3, %v1737_v60 }
 0x276   : > { %v2228_v0 = vpop.eup %2227  ;;  %v1747_v13 = vmul.f32 %v1731_v14, %v3308_v27  ;;  %2239 = vtanh.f32 %v1682_v29  ;;  %v1701_v10 = vmul.f32 %v2226_v51, %v3414_v61  ;;  %v1767_v7 = vmul.f32 %v1754_v3, %v1739_v43 }
 0x277   : > { %v2230_v57 = vpop.eup %2229  ;;  %v1703_v58 = vmul.f32 %v2228_v0, %v3414_v61  ;;  %v1769_v12 = vmul.f32 %v1754_v3, %v1741_v2  ;;  %v1771_v24 = vmul.f32 %v1754_v3, %v1743_v44  ;;  %v1773_v42 = vmul.f32 %v1754_v3, %v1745_v15 }
 0x278   : > { %v2232_v9 = vpop.eup %2231  ;;  %v1705_v21 = vmul.f32 %v2230_v57, %v3414_v61  ;;  %v1718_v55 = vadd.f32 %v3416_v36, %v1701_v10  ;;  %v1775_v47 = vmul.f32 %v1754_v3, %v1747_v13  ;;  %v3465_v22 = vstv %s3445_s14  ;;  %s2306_s14 = scalar_lea.hbm %s3532_s8, 32 }
 0x279   : > { %v2234_v37 = vpop.eup %2233  ;;  %v1707_v27 = vmul.f32 %v2232_v9, %v3414_v61  ;;  %v1720_v41 = vadd.f32 %v3416_v36, %v1703_v58  ;;  %p2308_p7 = scmp.lt.s32.totalorder %s2306_s14, %s2302_s27 }
 0x27a   : > { %v2236_v23 = vpop.eup %2235  ;;  %v1709_v62 = vmul.f32 %v2234_v37, %v3414_v61  ;;  %v1722_v32 = vadd.f32 %v3416_v36, %v1705_v21  ;;  %v1734_v25 = vmul.f32 %v1718_v55, %v3290_v16 }
 0x27b   : > { %v2238_v35 = vpop.eup %2237  ;;  %v1711_v20 = vmul.f32 %v2236_v23, %v3414_v61  ;;  %v1724_v18 = vadd.f32 %v3416_v36, %v1707_v27  ;;  %v1736_v48 = vmul.f32 %v1720_v41, %v3292_v4  ;;  %p2309_p8 = por %p2308_p7, %p2307_p5 }
 0x27c   : > { %v2240_v59 = vpop.eup %2239  ;;  %v1713_v11 = vmul.f32 %v2238_v35, %v3414_v61  ;;  %v1726_v40 = vadd.f32 %v3416_v36, %v1709_v62  ;;  %v1738_v30 = vmul.f32 %v1722_v32, %v3297_v19  ;;  %v1762_v6 = vmul.f32 %v1759_v31, %v1734_v25 }
 0x27d   : > { %v1715_v16 = vmul.f32 %v2240_v59, %v3414_v61  ;;  %v1728_v17 = vadd.f32 %v3416_v36, %v1711_v20  ;;  %v1740_v26 = vmul.f32 %v1724_v18, %v3304_v28  ;;  %v1764_v53 = vmul.f32 %v1759_v31, %v1736_v48  ;;  %p2310_p9 = pnand %p2309_p8, %p2305_p4 }
 0x27e   : > { %v1730_v50 = vadd.f32 %v3416_v36, %v1713_v11  ;;  %v1742_v4 = vmul.f32 %v1726_v40, %v3310_v5  ;;  %v1766_v1 = vmul.f32 %v1759_v31, %v1738_v30  ;;  %v1777_v63 = vadd.f32 %v1762_v6, %v1761_v33 }
 0x27f   : > { %v1732_v39 = vadd.f32 %v3416_v36, %v1715_v16  ;;  %v1744_v38 = vmul.f32 %v1728_v17, %v3325_v52  ;;  %v1768_v8 = vmul.f32 %v1759_v31, %v1740_v26  ;;  %v1784_v19 = vadd.f32 %v1764_v53, %v1763_v34 }
 0x280   : > { %v1746_v14 = vmul.f32 %v1730_v50, %v3340_v54  ;;  %v1770_v61 = vmul.f32 %v1759_v31, %v1742_v4  ;;  %v1778_v29 = vrot.slane %v1777_v63, 4  ;;  %v1791_v45 = vadd.f32 %v1766_v1, %v1765_v49 }
 0x281   : > { %v1748_v28 = vmul.f32 %v1732_v39, %v3348_v56  ;;  %v1772_v46 = vmul.f32 %v1759_v31, %v1744_v38  ;;  %v1785_v60 = vrot.slane %v1784_v19, 4  ;;  %v1798_v3 = vadd.f32 %v1768_v8, %v1767_v7 }
 0x282   : > { %v1774_v43 = vmul.f32 %v1759_v31, %v1746_v14  ;;  %v1779_v5 = vadd.f32 %v1778_v29, %v1777_v63  ;;  %v1792_v2 = vrot.slane %v1791_v45, 4  ;;  %v1805_v51 = vadd.f32 %v1770_v61, %v1769_v12 }
 0x283   : > { %v1776_v44 = vmul.f32 %v1759_v31, %v1748_v28  ;;  %v1786_v36 = vadd.f32 %v1785_v60, %v1784_v19  ;;  %v1799_v15 = vrot.slane %v1798_v3, 4  ;;  %v1812_v52 = vadd.f32 %v1772_v46, %v1771_v24 }
 0x284   : > { %v1780_v0 = vrot.slane %v1779_v5, 2  ;;  %v1793_v13 = vadd.f32 %v1792_v2, %v1791_v45  ;;  %v1806_v10 = vrot.slane %v1805_v51, 4  ;;  %v1819_v54 = vadd.f32 %v1774_v43, %v1773_v42 }
 0x285   : > { %v1787_v57 = vrot.slane %v1786_v36, 2  ;;  %v1800_v58 = vadd.f32 %v1799_v15, %v1798_v3  ;;  %v1813_v33 = vrot.slane %v1812_v52, 4  ;;  %v1826_v56 = vadd.f32 %v1776_v44, %v1775_v47 }
 0x286   : > { %v1781_v34 = vadd.f32 %v1780_v0, %v1779_v5  ;;  %v1794_v49 = vrot.slane %v1793_v13, 2  ;;  %v1807_v9 = vadd.f32 %v1806_v10, %v1805_v51  ;;  %v1820_v21 = vrot.slane %v1819_v54, 4 }
 0x287   : > { %v1788_v55 = vadd.f32 %v1787_v57, %v1786_v36  ;;  %v1801_v7 = vrot.slane %v1800_v58, 2  ;;  %v1814_v12 = vadd.f32 %v1813_v33, %v1812_v52  ;;  %v1827_v37 = vrot.slane %v1826_v56, 4 }
 0x288   : > { %v1782_v27 = vrot.slane %v1781_v34, 1  ;;  %v1795_v41 = vadd.f32 %v1794_v49, %v1793_v13  ;;  %v1808_v24 = vrot.slane %v1807_v9, 2  ;;  %v1821_v42 = vadd.f32 %v1820_v21, %v1819_v54 }
 0x289   : > { %v1789_v23 = vrot.slane %v1788_v55, 1  ;;  %v1802_v62 = vadd.f32 %v1801_v7, %v1800_v58  ;;  %v1815_v32 = vrot.slane %v1814_v12, 2  ;;  %v1828_v25 = vadd.f32 %v1827_v37, %v1826_v56 }
 0x28a   : > { %v1783_v47 = vadd.f32 %v1782_v27, %v1781_v34  ;;  %v1796_v35 = vrot.slane %v1795_v41, 1  ;;  %v1809_v31 = vadd.f32 %v1808_v24, %v1807_v9  ;;  %v1822_v20 = vrot.slane %v1821_v42, 2 }
 0x28b   : > { %v1790_v18 = vadd.f32 %v1789_v23, %v1788_v55  ;;  %v1803_v48 = vrot.slane %v1802_v62, 1  ;;  %v1816_v59 = vadd.f32 %v1815_v32, %v1814_v12  ;;  %v1829_v11 = vrot.slane %v1828_v25, 2 }
 0x28c   : > { %v1797_v40 = vadd.f32 %v1796_v35, %v1795_v41  ;;  %v1810_v30 = vrot.slane %v1809_v31, 1  ;;  %v1823_v6 = vadd.f32 %v1822_v20, %v1821_v42  ;;  %v1835_v16 = vadd.f32 %v3465_v22, %v1783_v47 }
 0x28d   : > { %v1804_v17 = vadd.f32 %v1803_v48, %v1802_v62  ;;  %v1817_v26 = vrot.slane %v1816_v59, 1  ;;  %v1830_v53 = vadd.f32 %v1829_v11, %v1828_v25  ;;  %v1836_v50 = vadd.f32 %v3465_v22, %v1790_v18 }
 0x28e   : > { %v1811_v4 = vadd.f32 %v1810_v30, %v1809_v31  ;;  %v1824_v1 = vrot.slane %v1823_v6, 1  ;;  %v1837_v63 = vadd.f32 %v3465_v22, %v1797_v40 }
 0x28f   : > { %v1818_v39 = vadd.f32 %v1817_v26, %v1816_v59  ;;  %v1831_v38 = vrot.slane %v1830_v53, 1  ;;  %v1838_v8 = vadd.f32 %v3465_v22, %v1804_v17  ;;  %v1852_v19 = vsel %vm1851_vm5, %v1836_v50, %v1835_v16 }
 0x290   : > { %v1825_v14 = vadd.f32 %v1824_v1, %v1823_v6  ;;  %v1839_v61 = vadd.f32 %v3465_v22, %v1811_v4  ;;  %v1854_v29 = vsel %vm1853_vm6, %v1837_v63, %v1852_v19 }
 0x291   : > { %v1832_v45 = vadd.f32 %v1831_v38, %v1830_v53  ;;  %v1840_v28 = vadd.f32 %v3465_v22, %v1818_v39  ;;  %v1856_v46 = vsel %vm1855_vm7, %v1838_v8, %v1854_v29 }
 0x292   : > { %v1841_v60 = vadd.f32 %v3465_v22, %v1825_v14  ;;  %v1858_v3 = vsel %vm1857_vm8, %v1839_v61, %v1856_v46 }
 0x293   : > { %v1842_v43 = vadd.f32 %v3465_v22, %v1832_v45  ;;  %v1860_v5 = vsel %vm1859_vm9, %v1840_v28, %v1858_v3 }
 0x294   : > { %v1862_v2 = vsel %vm1861_vm10, %v1841_v60, %v1860_v5 }
 0x295   : > { %v1864_v51 = vsel %vm1863_vm11, %v1842_v43, %v1862_v2 }
 0x296   : > { %1866 = vst [vmem:[%s398_s6] sm:$0xff] %v1864_v51 }
 0x297   : > { %2313 = shalt.err (!%p2310_p9)
}
 0x298   : > { %2047 = dma.vmem_to_hbm [thread:$0]  (%p2455_p6), %s1881_s22, 128, %s1883_s24, %s1868_s19  }
 0x299 PF: > { %p2064_p11 = scmp.ge.s32.totalorder %s2356_s10, 2  ;;  %s1894_s16 = sand.u32 1, %s2344_s29  }
 0x29a   : > { %s1895_s23 = scalar_lea.sflag [#allocation6], %s1894_s16 }
 0x29b   : > { %p2057_p12 = pnand %p2064_p11, %p2461_p10 }
 0x29d   : > { %p2058_p13 = pneg %p2057_p12 }
 0x29f   : > { %2339 = dma.done.wait (%p2058_p13), %s1895_s23, 128  }
 0x2a0   : > { %2341 = vsyncadd (%p2058_p13), %s1895_s23, 4294967168  ;;  %p21_p0 = scmp.ge.s32.totalorder %s2437_s12, 6   ;;  %s3598_s29 = smov %s2348_s30 }
 0x2a1   : > { %s3599_s30 = smov %s2352_s9  ;;  %s3600_s9 = smov %s2449_s15 }
 0x2a2   : > { %s3601_s10 = smov %s2437_s12  ;;  %23 = sbr.rel (!%p21_p0) target bundleno = 7 (0x7), region = 140 }
 0x2a7   :  { %1901 = vsyncpa [#allocation5], 1 }
 0x2a8   :  { %1903 = vsyncpa [#allocation5 + $0x1], 1 }
 0x2a9   :  { %1904 = vsyncpa [#allocation6], 1 }
 0x2aa   :  { %1906 = vsyncpa [#allocation6 + $0x1], 1 }
 0x2ab   :  { %1907 = vsyncpa [#allocation7], 1 }
 0x2ac   :  { %1909 = vsyncpa [#allocation7 + $0x1], 1 }

</bundles_post_ra>
